<compile_context>
chip_gen: v5e
topology: v5e:2x2
jax: 0.10.0
libtpu: 0.0.40
codegen_flags: <defaults>
</compile_context>

<pallas_src>
import functools

import jax
import jax.numpy as jnp
from jax.experimental import pallas as pl
from jax.experimental.pallas import tpu as pltpu


# bf16 matmul operands (MXU-native on v5e/v6e/v7x); elementwise/softmax/LN
# statistics stay in f32 (v5e VPU/EUP have no bf16 path).
_MATMUL_DTYPE = jnp.bfloat16


def _cdiv(a, b):
    return (a + b - 1) // b


# ----------------------------------------------------------------------------
# Fused per-layer kernel: (+pos) MHA + residual + LN1 + FFN + residual + LN2
# One grid step processes `wb` windows.
# ----------------------------------------------------------------------------
def _fused_encoder_kernel(feat_ref, pos_ref, bias_ref,
                          wq_ref, wk_ref, wv_ref, bq_ref, bk_ref, bv_ref,
                          wo_ref, bo_ref,
                          ln1w_ref, ln1b_ref,
                          w1_ref, b1_ref, w2_ref, b2_ref,
                          ln2w_ref, ln2b_ref,
                          o_ref, *, nhead):
    Wb, L, d = feat_ref.shape
    dh = d // nhead
    scale = 1.0 / float(dh) ** 0.5
    cdt = wq_ref.dtype                       # matmul operand dtype (bf16)
    eps = 1e-5

    feat = feat_ref[...]                     # (Wb, L, d) f32; value + residual
    qk = feat + pos_ref[...]                 # q = k = feat + pos (in-kernel add)
    bias = bias_ref[...]                     # (Wb, 1, L) additive key-pad bias

    x2 = qk.reshape(Wb * L, d).astype(cdt)
    v2 = feat.reshape(Wb * L, d).astype(cdt)

    # Batched QKV projections over all Wb windows at once (f32 accumulation).
    q = jnp.dot(x2, wq_ref[...], preferred_element_type=jnp.float32) + bq_ref[...]
    k = jnp.dot(x2, wk_ref[...], preferred_element_type=jnp.float32) + bk_ref[...]
    v = jnp.dot(v2, wv_ref[...], preferred_element_type=jnp.float32) + bv_ref[...]

    q3 = q.reshape(Wb, L, d)
    k3 = k.reshape(Wb, L, d)
    v3 = v.reshape(Wb, L, d)
    wo = wo_ref[...]

    # Per-head attention, batched over the Wb windows of this grid step.
    # Output projection folded per head (attn @ Wo == sum_h attn_h @ Wo[h])
    # to avoid a cross-lane concatenate/relayout of head outputs.
    acc = jnp.zeros((Wb * L, d), jnp.float32)
    for h in range(nhead):                   # static, small
        sl = slice(h * dh, (h + 1) * dh)
        qh = (q3[:, :, sl] * scale).astype(cdt)
        kh = k3[:, :, sl].astype(cdt)
        vh = v3[:, :, sl].astype(cdt)
        s = jnp.einsum('wqd,wkd->wqk', qh, kh,
                       preferred_element_type=jnp.float32) + bias
        s = s - jnp.max(s, axis=-1, keepdims=True)
        p = jnp.exp(s)
        p = p * pl.reciprocal(jnp.sum(p, axis=-1, keepdims=True), approx=True)
        oh = jnp.einsum('wqk,wkd->wqd', p.astype(cdt), vh,
                        preferred_element_type=jnp.float32)
        acc = acc + jnp.dot(oh.reshape(Wb * L, dh).astype(cdt), wo[sl, :],
                            preferred_element_type=jnp.float32)
    attn = acc + bo_ref[...]                 # (Wb*L, d)

    # residual 1 + LayerNorm1 (f32 statistics)
    x = feat.reshape(Wb * L, d) + attn
    mu = jnp.mean(x, axis=-1, keepdims=True)
    var = jnp.mean((x - mu) ** 2, axis=-1, keepdims=True)
    x = (x - mu) * jax.lax.rsqrt(var + eps) * ln1w_ref[...] + ln1b_ref[...]

    # FFN: linear1 -> relu -> linear2
    hid = jnp.dot(x.astype(cdt), w1_ref[...],
                  preferred_element_type=jnp.float32) + b1_ref[...]
    hid = jnp.maximum(hid, 0.0)
    y = jnp.dot(hid.astype(cdt), w2_ref[...],
                preferred_element_type=jnp.float32) + b2_ref[...]

    # residual 2 + LayerNorm2
    x = x + y
    mu = jnp.mean(x, axis=-1, keepdims=True)
    var = jnp.mean((x - mu) ** 2, axis=-1, keepdims=True)
    out = (x - mu) * jax.lax.rsqrt(var + eps) * ln2w_ref[...] + ln2b_ref[...]
    o_ref[...] = out.reshape(Wb, L, d).astype(o_ref.dtype)


def fused_encoder_layer(feat_3d, pos_3d, bias_3d, params, nhead, wb=16):
    """One SST EncoderLayer (post_norm=True) on the windowed layout."""
    Wn, L, d = feat_3d.shape
    dff = params["w1"].shape[1]

    # Batch windows per grid step to amortize per-step overhead, but keep
    # >= 2 grid steps when possible so both v7x TensorCores get work.
    wb = max(1, min(int(wb), _cdiv(Wn, 2)))
    Wp = _cdiv(Wn, wb) * wb
    if Wp != Wn:
        pad = ((0, Wp - Wn), (0, 0), (0, 0))
        feat_3d = jnp.pad(feat_3d, pad)
        pos_3d = jnp.pad(pos_3d, pad)
        bias_3d = jnp.pad(bias_3d, pad)

    cdt = _MATMUL_DTYPE
    wq = params["wq"].astype(cdt)
    wk = params["wk"].astype(cdt)
    wv = params["wv"].astype(cdt)
    wo = params["wo"].astype(cdt)
    w1 = params["w1"].astype(cdt)
    w2 = params["w2"].astype(cdt)

    full2 = lambda i: (0, 0)
    win3 = lambda i: (i, 0, 0)

    # NOTE(v7x): when scaling wb/d_model for production sizes, budget VMEM
    # against 64 MiB physical (default scoped 32 MiB), not v5e/v6e's 128 MiB.
    return pl.pallas_call(
        functools.partial(_fused_encoder_kernel, nhead=nhead),
        out_shape=jax.ShapeDtypeStruct((Wp, L, d), jnp.float32),
        grid=(Wp // wb,),
        in_specs=[
            pl.BlockSpec((wb, L, d), win3),      # feat (v + residual)
            pl.BlockSpec((wb, L, d), win3),      # pos
            pl.BlockSpec((wb, 1, L), win3),      # additive key-padding bias
            pl.BlockSpec((d, d), full2),         # wq
            pl.BlockSpec((d, d), full2),         # wk
            pl.BlockSpec((d, d), full2),         # wv
            pl.BlockSpec((1, d), full2),         # bq
            pl.BlockSpec((1, d), full2),         # bk
            pl.BlockSpec((1, d), full2),         # bv
            pl.BlockSpec((d, d), full2),         # wo
            pl.BlockSpec((1, d), full2),         # bo
            pl.BlockSpec((1, d), full2),         # ln1_w
            pl.BlockSpec((1, d), full2),         # ln1_b
            pl.BlockSpec((d, dff), full2),       # w1
            pl.BlockSpec((1, dff), full2),       # b1
            pl.BlockSpec((dff, d), full2),       # w2
            pl.BlockSpec((1, d), full2),         # b2
            pl.BlockSpec((1, d), full2),         # ln2_w
            pl.BlockSpec((1, d), full2),         # ln2_b
        ],
        out_specs=pl.BlockSpec((wb, L, d), win3),
        compiler_params=pltpu.CompilerParams(
            dimension_semantics=("parallel",),
            vmem_limit_bytes=32 * 1024 * 1024,
        ),
    )(feat_3d, pos_3d, bias_3d,
      wq, wk, wv, params["bq"], params["bk"], params["bv"],
      wo, params["bo"],
      params["ln1_w"], params["ln1_b"],
      w1, params["b1"], w2, params["b2"],
      params["ln2_w"], params["ln2_b"])


# ----------------------------------------------------------------------------
# Plain-JAX glue: flat <-> window mapping + EncoderLayer + BasicShiftBlockV2
# ----------------------------------------------------------------------------
def encoder_layer_forward(src, pos_3d, win_idx, tok_idx, key_mask, params,
                          num_windows, max_tokens, nhead, wb=16):
    N, d = src.shape
    # flat2window_v2: scatter flat tokens into padded window tensor (XLA glue)
    feat_3d = jnp.zeros((num_windows, max_tokens, d), src.dtype)
    feat_3d = feat_3d.at[win_idx, tok_idx].set(src)
    # key_padding_mask (True = ignore) -> additive bias, kept in f32
    bias_3d = jnp.where(key_mask, -1e9, 0.0).astype(jnp.float32)
    bias_3d = bias_3d[:, None, :]                        # (Wn, 1, L)

    out_3d = fused_encoder_layer(feat_3d, pos_3d, bias_3d, params, nhead, wb=wb)

    # window2flat_v2: gather valid slots back to flat layout (XLA glue)
    # TODO(synk): fuse this gather (and the scatter above) into the kernel via
    # scalar-prefetched indices to drop the remaining HBM round trip.
    return out_3d[win_idx, tok_idx]


def basic_shift_block_v2(src, pos_list, ind_list, mask_list, params_list,
                         num_windows, max_tokens, nhead, wb=16):
    num_shifts = len(pos_list)
    assert num_shifts in (1, 2)
    output = src
    for i in range(2):
        tid = i % num_shifts
        win_idx, tok_idx = ind_list[tid]
        output = encoder_layer_forward(
            output, pos_list[tid], win_idx, tok_idx, mask_list[tid],
            params_list[i], num_windows, max_tokens, nhead, wb=wb)
    return output


# ----------------------------------------------------------------------------
# Deterministic synthetic parameters (matmul layout: x @ W, W is (in, out))
# ----------------------------------------------------------------------------
def init_encoder_params(key, d_model, dff):
    ks = jax.random.split(key, 8)
    s = 0.05
    rnd = lambda k, shape: jax.random.normal(k, shape, jnp.float32) * s
    return dict(
        wq=rnd(ks[0], (d_model, d_model)), bq=jnp.zeros((1, d_model), jnp.float32),
        wk=rnd(ks[1], (d_model, d_model)), bk=jnp.zeros((1, d_model), jnp.float32),
        wv=rnd(ks[2], (d_model, d_model)), bv=jnp.zeros((1, d_model), jnp.float32),
        wo=rnd(ks[3], (d_model, d_model)), bo=jnp.zeros((1, d_model), jnp.float32),
        w1=rnd(ks[4], (d_model, dff)), b1=jnp.zeros((1, dff), jnp.float32),
        w2=rnd(ks[5], (dff, d_model)), b2=jnp.zeros((1, d_model), jnp.float32),
        ln1_w=jnp.ones((1, d_model), jnp.float32),
        ln1_b=jnp.zeros((1, d_model), jnp.float32),
        ln2_w=jnp.ones((1, d_model), jnp.float32),
        ln2_b=jnp.zeros((1, d_model), jnp.float32),
    )


if __name__ == "__main__":
    d_model, nhead, dim_feedforward = 32, 2, 64
    N_tokens, num_windows, max_tokens = 24, 4, 8   # 6 valid tokens / window

    key = jax.random.PRNGKey(0)
    k_src, k_pos0, k_pos1, k_p0, k_p1 = jax.random.split(key, 5)

    src = jax.random.normal(k_src, (N_tokens, d_model), jnp.float32)

    # shift 0: contiguous token -> window assignment
    win_idx0 = jnp.repeat(jnp.arange(num_windows), N_tokens // num_windows)
    tok_idx0 = jnp.tile(jnp.arange(N_tokens // num_windows), num_windows)
    mask0 = jnp.broadcast_to(
        jnp.arange(max_tokens)[None, :] >= (N_tokens // num_windows),
        (num_windows, max_tokens))

    # shift 1: round-robin assignment (different window grouping)
    win_idx1 = jnp.arange(N_tokens) % num_windows
    tok_idx1 = jnp.arange(N_tokens) // num_windows
    mask1 = jnp.broadcast_to(
        jnp.arange(max_tokens)[None, :] >= (N_tokens // num_windows),
        (num_windows, max_tokens))

    pos0 = jax.random.normal(k_pos0, (num_windows, max_tokens, d_model), jnp.float32)
    pos1 = jax.random.normal(k_pos1, (num_windows, max_tokens, d_model), jnp.float32)

    params_list = [init_encoder_params(k_p0, d_model, dim_feedforward),
                   init_encoder_params(k_p1, d_model, dim_feedforward)]

    out = basic_shift_block_v2(
        src,
        pos_list=[pos0, pos1],
        ind_list=[(win_idx0, tok_idx0), (win_idx1, tok_idx1)],
        mask_list=[mask0, mask1],
        params_list=params_list,
        num_windows=num_windows, max_tokens=max_tokens, nhead=nhead, wb=16)

    out = jax.block_until_ready(out)
    assert out.shape == (N_tokens, d_model)
    assert bool(jnp.all(jnp.isfinite(out)))
    print("KERNEL_OK")
</pallas_src>

<mosaic_0001>
module attributes {stable_mosaic.version = 11 : i64} {
  func.func @_fused_encoder_kernel(%arg0: i32, %arg1: memref<2x8x32xf32, #tpu.memory_space<vmem>>, %arg2: memref<2x8x32xf32, #tpu.memory_space<vmem>>, %arg3: memref<2x1x8xf32, #tpu.memory_space<vmem>>, %arg4: memref<32x32xbf16, #tpu.memory_space<vmem>>, %arg5: memref<32x32xbf16, #tpu.memory_space<vmem>>, %arg6: memref<32x32xbf16, #tpu.memory_space<vmem>>, %arg7: memref<1x32xf32, #tpu.memory_space<vmem>>, %arg8: memref<1x32xf32, #tpu.memory_space<vmem>>, %arg9: memref<1x32xf32, #tpu.memory_space<vmem>>, %arg10: memref<32x32xbf16, #tpu.memory_space<vmem>>, %arg11: memref<1x32xf32, #tpu.memory_space<vmem>>, %arg12: memref<1x32xf32, #tpu.memory_space<vmem>>, %arg13: memref<1x32xf32, #tpu.memory_space<vmem>>, %arg14: memref<32x64xbf16, #tpu.memory_space<vmem>>, %arg15: memref<1x64xf32, #tpu.memory_space<vmem>>, %arg16: memref<64x32xbf16, #tpu.memory_space<vmem>>, %arg17: memref<1x32xf32, #tpu.memory_space<vmem>>, %arg18: memref<1x32xf32, #tpu.memory_space<vmem>>, %arg19: memref<1x32xf32, #tpu.memory_space<vmem>>, %arg20: memref<2x8x32xf32, #tpu.memory_space<vmem>>) attributes {dimension_semantics = [#tpu.dimension_semantics<parallel>], iteration_bounds = array<i64: 2>, scalar_prefetch = 0 : i64, scratch_operands = 0 : i64, tpu.core_type = #tpu.core_type<tc>, window_params = [{transform_indices = @transform_0, window_bounds = array<i64: 2, 8, 32>}, {transform_indices = @transform_1, window_bounds = array<i64: 2, 8, 32>}, {transform_indices = @transform_2, window_bounds = array<i64: 2, 1, 8>}, {pipeline_mode = #tpu.pipeline_mode<synchronous>, transform_indices = @transform_3, window_bounds = array<i64: 32, 32>}, {pipeline_mode = #tpu.pipeline_mode<synchronous>, transform_indices = @transform_4, window_bounds = array<i64: 32, 32>}, {pipeline_mode = #tpu.pipeline_mode<synchronous>, transform_indices = @transform_5, window_bounds = array<i64: 32, 32>}, {pipeline_mode = #tpu.pipeline_mode<synchronous>, transform_indices = @transform_6, window_bounds = array<i64: 1, 32>}, {pipeline_mode = #tpu.pipeline_mode<synchronous>, transform_indices = @transform_7, window_bounds = array<i64: 1, 32>}, {pipeline_mode = #tpu.pipeline_mode<synchronous>, transform_indices = @transform_8, window_bounds = array<i64: 1, 32>}, {pipeline_mode = #tpu.pipeline_mode<synchronous>, transform_indices = @transform_9, window_bounds = array<i64: 32, 32>}, {pipeline_mode = #tpu.pipeline_mode<synchronous>, transform_indices = @transform_10, window_bounds = array<i64: 1, 32>}, {pipeline_mode = #tpu.pipeline_mode<synchronous>, transform_indices = @transform_11, window_bounds = array<i64: 1, 32>}, {pipeline_mode = #tpu.pipeline_mode<synchronous>, transform_indices = @transform_12, window_bounds = array<i64: 1, 32>}, {pipeline_mode = #tpu.pipeline_mode<synchronous>, transform_indices = @transform_13, window_bounds = array<i64: 32, 64>}, {pipeline_mode = #tpu.pipeline_mode<synchronous>, transform_indices = @transform_14, window_bounds = array<i64: 1, 64>}, {pipeline_mode = #tpu.pipeline_mode<synchronous>, transform_indices = @transform_15, window_bounds = array<i64: 64, 32>}, {pipeline_mode = #tpu.pipeline_mode<synchronous>, transform_indices = @transform_16, window_bounds = array<i64: 1, 32>}, {pipeline_mode = #tpu.pipeline_mode<synchronous>, transform_indices = @transform_17, window_bounds = array<i64: 1, 32>}, {pipeline_mode = #tpu.pipeline_mode<synchronous>, transform_indices = @transform_18, window_bounds = array<i64: 1, 32>}, {transform_indices = @transform_19, window_bounds = array<i64: 2, 8, 32>}]} {
    %c0 = arith.constant 0 : index
    %c0_0 = arith.constant 0 : index
    %c0_1 = arith.constant 0 : index
    %0 = vector.load %arg1[%c0, %c0_0, %c0_1] : memref<2x8x32xf32, #tpu.memory_space<vmem>>, vector<2x8x32xf32>
    %c0_2 = arith.constant 0 : index
    %c0_3 = arith.constant 0 : index
    %c0_4 = arith.constant 0 : index
    %1 = vector.load %arg2[%c0_2, %c0_3, %c0_4] : memref<2x8x32xf32, #tpu.memory_space<vmem>>, vector<2x8x32xf32>
    %2 = arith.addf %0, %1 : vector<2x8x32xf32>
    %c0_5 = arith.constant 0 : index
    %c0_6 = arith.constant 0 : index
    %c0_7 = arith.constant 0 : index
    %3 = vector.load %arg3[%c0_5, %c0_6, %c0_7] : memref<2x1x8xf32, #tpu.memory_space<vmem>>, vector<2x1x8xf32>
    %4 = vector.shape_cast %2 : vector<2x8x32xf32> to vector<16x32xf32>
    %5 = arith.truncf %4 : vector<16x32xf32> to vector<16x32xbf16>
    %6 = vector.shape_cast %0 : vector<2x8x32xf32> to vector<16x32xf32>
    %7 = arith.truncf %6 : vector<16x32xf32> to vector<16x32xbf16>
    %c0_8 = arith.constant 0 : index
    %c0_9 = arith.constant 0 : index
    %8 = vector.load %arg4[%c0_8, %c0_9] : memref<32x32xbf16, #tpu.memory_space<vmem>>, vector<32x32xbf16>
    %cst = arith.constant dense<0.000000e+00> : vector<16x32xf32>
    %9 = tpu.matmul %5, %8, %cst {dimension_numbers = #tpu.dot_dimension_numbers<[1], [0], [0], [1], [0, 0, 1, 1], [], []>} : vector<16x32xbf16>, vector<32x32xbf16>, vector<16x32xf32> -> vector<16x32xf32>
    %c0_10 = arith.constant 0 : index
    %c0_11 = arith.constant 0 : index
    %10 = vector.load %arg7[%c0_10, %c0_11] : memref<1x32xf32, #tpu.memory_space<vmem>>, vector<1x32xf32>
    %11 = vector.broadcast %10 : vector<1x32xf32> to vector<16x32xf32>
    %12 = arith.addf %9, %11 : vector<16x32xf32>
    %c0_12 = arith.constant 0 : index
    %c0_13 = arith.constant 0 : index
    %13 = vector.load %arg5[%c0_12, %c0_13] : memref<32x32xbf16, #tpu.memory_space<vmem>>, vector<32x32xbf16>
    %cst_14 = arith.constant dense<0.000000e+00> : vector<16x32xf32>
    %14 = tpu.matmul %5, %13, %cst_14 {dimension_numbers = #tpu.dot_dimension_numbers<[1], [0], [0], [1], [0, 0, 1, 1], [], []>} : vector<16x32xbf16>, vector<32x32xbf16>, vector<16x32xf32> -> vector<16x32xf32>
    %c0_15 = arith.constant 0 : index
    %c0_16 = arith.constant 0 : index
    %15 = vector.load %arg8[%c0_15, %c0_16] : memref<1x32xf32, #tpu.memory_space<vmem>>, vector<1x32xf32>
    %16 = vector.broadcast %15 : vector<1x32xf32> to vector<16x32xf32>
    %17 = arith.addf %14, %16 : vector<16x32xf32>
    %c0_17 = arith.constant 0 : index
    %c0_18 = arith.constant 0 : index
    %18 = vector.load %arg6[%c0_17, %c0_18] : memref<32x32xbf16, #tpu.memory_space<vmem>>, vector<32x32xbf16>
    %cst_19 = arith.constant dense<0.000000e+00> : vector<16x32xf32>
    %19 = tpu.matmul %7, %18, %cst_19 {dimension_numbers = #tpu.dot_dimension_numbers<[1], [0], [0], [1], [0, 0, 1, 1], [], []>} : vector<16x32xbf16>, vector<32x32xbf16>, vector<16x32xf32> -> vector<16x32xf32>
    %c0_20 = arith.constant 0 : index
    %c0_21 = arith.constant 0 : index
    %20 = vector.load %arg9[%c0_20, %c0_21] : memref<1x32xf32, #tpu.memory_space<vmem>>, vector<1x32xf32>
    %21 = vector.broadcast %20 : vector<1x32xf32> to vector<16x32xf32>
    %22 = arith.addf %19, %21 : vector<16x32xf32>
    %23 = vector.shape_cast %12 : vector<16x32xf32> to vector<2x8x32xf32>
    %24 = vector.shape_cast %17 : vector<16x32xf32> to vector<2x8x32xf32>
    %25 = vector.shape_cast %22 : vector<16x32xf32> to vector<2x8x32xf32>
    %c0_22 = arith.constant 0 : index
    %c0_23 = arith.constant 0 : index
    %26 = vector.load %arg10[%c0_22, %c0_23] : memref<32x32xbf16, #tpu.memory_space<vmem>>, vector<32x32xbf16>
    %cst_24 = arith.constant 0.000000e+00 : f32
    %27 = vector.broadcast %cst_24 : f32 to vector<16x32xf32>
    %28 = vector.extract_strided_slice %23 {offsets = [0, 0, 0], sizes = [2, 8, 16], strides = [1, 1, 1]} : vector<2x8x32xf32> to vector<2x8x16xf32>
    %cst_25 = arith.constant 2.500000e-01 : f32
    %29 = vector.broadcast %cst_25 : f32 to vector<2x8x16xf32>
    %30 = arith.mulf %28, %29 : vector<2x8x16xf32>
    %31 = arith.truncf %30 : vector<2x8x16xf32> to vector<2x8x16xbf16>
    %32 = vector.extract_strided_slice %24 {offsets = [0, 0, 0], sizes = [2, 8, 16], strides = [1, 1, 1]} : vector<2x8x32xf32> to vector<2x8x16xf32>
    %33 = arith.truncf %32 : vector<2x8x16xf32> to vector<2x8x16xbf16>
    %34 = vector.extract_strided_slice %25 {offsets = [0, 0, 0], sizes = [2, 8, 16], strides = [1, 1, 1]} : vector<2x8x32xf32> to vector<2x8x16xf32>
    %35 = arith.truncf %34 : vector<2x8x16xf32> to vector<2x8x16xbf16>
    "tpu.trace_start"() <{level = 10 : i32, message = "wqd,wkd->wqk"}> : () -> ()
    %cst_26 = arith.constant dense<0.000000e+00> : vector<2x8x8xf32>
    %36 = tpu.matmul %31, %33, %cst_26 {dimension_numbers = #tpu.dot_dimension_numbers<[2], [2], [1], [1], [0, 0, 0, 1, 1, 1], [0], [0]>} : vector<2x8x16xbf16>, vector<2x8x16xbf16>, vector<2x8x8xf32> -> vector<2x8x8xf32>
    "tpu.trace_stop"() : () -> ()
    %37 = vector.broadcast %3 : vector<2x1x8xf32> to vector<2x8x8xf32>
    %38 = arith.addf %36, %37 : vector<2x8x8xf32>
    %cst_27 = arith.constant dense<0xFF800000> : vector<2x8xf32>
    %39 = vector.multi_reduction <maximumf>, %38, %cst_27 [2] : vector<2x8x8xf32> to vector<2x8xf32>
    %40 = vector.shape_cast %39 : vector<2x8xf32> to vector<2x8x1xf32>
    %41 = vector.broadcast %40 : vector<2x8x1xf32> to vector<2x8x8xf32>
    %42 = arith.subf %38, %41 : vector<2x8x8xf32>
    %43 = math.exp %42 : vector<2x8x8xf32>
    %cst_28 = arith.constant dense<0.000000e+00> : vector<2x8xf32>
    %44 = vector.multi_reduction <add>, %43, %cst_28 [2] : vector<2x8x8xf32> to vector<2x8xf32>
    %45 = vector.shape_cast %44 : vector<2x8xf32> to vector<2x8x1xf32>
    %46 = tpu.reciprocal %45 {approx = true} : vector<2x8x1xf32> -> vector<2x8x1xf32>
    %47 = vector.broadcast %46 : vector<2x8x1xf32> to vector<2x8x8xf32>
    %48 = arith.mulf %43, %47 : vector<2x8x8xf32>
    %49 = arith.truncf %48 : vector<2x8x8xf32> to vector<2x8x8xbf16>
    "tpu.trace_start"() <{level = 10 : i32, message = "wqk,wkd->wqd"}> : () -> ()
    %cst_29 = arith.constant dense<0.000000e+00> : vector<2x8x16xf32>
    %50 = tpu.matmul %49, %35, %cst_29 {dimension_numbers = #tpu.dot_dimension_numbers<[2], [1], [1], [2], [0, 0, 0, 1, 1, 2], [0], [0]>} : vector<2x8x8xbf16>, vector<2x8x16xbf16>, vector<2x8x16xf32> -> vector<2x8x16xf32>
    "tpu.trace_stop"() : () -> ()
    %51 = vector.shape_cast %50 : vector<2x8x16xf32> to vector<16x16xf32>
    %52 = arith.truncf %51 : vector<16x16xf32> to vector<16x16xbf16>
    %53 = vector.extract_strided_slice %26 {offsets = [0, 0], sizes = [16, 32], strides = [1, 1]} : vector<32x32xbf16> to vector<16x32xbf16>
    %cst_30 = arith.constant dense<0.000000e+00> : vector<16x32xf32>
    %54 = tpu.matmul %52, %53, %cst_30 {dimension_numbers = #tpu.dot_dimension_numbers<[1], [0], [0], [1], [0, 0, 1, 1], [], []>} : vector<16x16xbf16>, vector<16x32xbf16>, vector<16x32xf32> -> vector<16x32xf32>
    %55 = arith.addf %27, %54 : vector<16x32xf32>
    %56 = vector.extract_strided_slice %23 {offsets = [0, 0, 16], sizes = [2, 8, 16], strides = [1, 1, 1]} : vector<2x8x32xf32> to vector<2x8x16xf32>
    %cst_31 = arith.constant 2.500000e-01 : f32
    %57 = vector.broadcast %cst_31 : f32 to vector<2x8x16xf32>
    %58 = arith.mulf %56, %57 : vector<2x8x16xf32>
    %59 = arith.truncf %58 : vector<2x8x16xf32> to vector<2x8x16xbf16>
    %60 = vector.extract_strided_slice %24 {offsets = [0, 0, 16], sizes = [2, 8, 16], strides = [1, 1, 1]} : vector<2x8x32xf32> to vector<2x8x16xf32>
    %61 = arith.truncf %60 : vector<2x8x16xf32> to vector<2x8x16xbf16>
    %62 = vector.extract_strided_slice %25 {offsets = [0, 0, 16], sizes = [2, 8, 16], strides = [1, 1, 1]} : vector<2x8x32xf32> to vector<2x8x16xf32>
    %63 = arith.truncf %62 : vector<2x8x16xf32> to vector<2x8x16xbf16>
    "tpu.trace_start"() <{level = 10 : i32, message = "wqd,wkd->wqk"}> : () -> ()
    %cst_32 = arith.constant dense<0.000000e+00> : vector<2x8x8xf32>
    %64 = tpu.matmul %59, %61, %cst_32 {dimension_numbers = #tpu.dot_dimension_numbers<[2], [2], [1], [1], [0, 0, 0, 1, 1, 1], [0], [0]>} : vector<2x8x16xbf16>, vector<2x8x16xbf16>, vector<2x8x8xf32> -> vector<2x8x8xf32>
    "tpu.trace_stop"() : () -> ()
    %65 = vector.broadcast %3 : vector<2x1x8xf32> to vector<2x8x8xf32>
    %66 = arith.addf %64, %65 : vector<2x8x8xf32>
    %cst_33 = arith.constant dense<0xFF800000> : vector<2x8xf32>
    %67 = vector.multi_reduction <maximumf>, %66, %cst_33 [2] : vector<2x8x8xf32> to vector<2x8xf32>
    %68 = vector.shape_cast %67 : vector<2x8xf32> to vector<2x8x1xf32>
    %69 = vector.broadcast %68 : vector<2x8x1xf32> to vector<2x8x8xf32>
    %70 = arith.subf %66, %69 : vector<2x8x8xf32>
    %71 = math.exp %70 : vector<2x8x8xf32>
    %cst_34 = arith.constant dense<0.000000e+00> : vector<2x8xf32>
    %72 = vector.multi_reduction <add>, %71, %cst_34 [2] : vector<2x8x8xf32> to vector<2x8xf32>
    %73 = vector.shape_cast %72 : vector<2x8xf32> to vector<2x8x1xf32>
    %74 = tpu.reciprocal %73 {approx = true} : vector<2x8x1xf32> -> vector<2x8x1xf32>
    %75 = vector.broadcast %74 : vector<2x8x1xf32> to vector<2x8x8xf32>
    %76 = arith.mulf %71, %75 : vector<2x8x8xf32>
    %77 = arith.truncf %76 : vector<2x8x8xf32> to vector<2x8x8xbf16>
    "tpu.trace_start"() <{level = 10 : i32, message = "wqk,wkd->wqd"}> : () -> ()
    %cst_35 = arith.constant dense<0.000000e+00> : vector<2x8x16xf32>
    %78 = tpu.matmul %77, %63, %cst_35 {dimension_numbers = #tpu.dot_dimension_numbers<[2], [1], [1], [2], [0, 0, 0, 1, 1, 2], [0], [0]>} : vector<2x8x8xbf16>, vector<2x8x16xbf16>, vector<2x8x16xf32> -> vector<2x8x16xf32>
    "tpu.trace_stop"() : () -> ()
    %79 = vector.shape_cast %78 : vector<2x8x16xf32> to vector<16x16xf32>
    %80 = arith.truncf %79 : vector<16x16xf32> to vector<16x16xbf16>
    %81 = vector.extract_strided_slice %26 {offsets = [16, 0], sizes = [16, 32], strides = [1, 1]} : vector<32x32xbf16> to vector<16x32xbf16>
    %cst_36 = arith.constant dense<0.000000e+00> : vector<16x32xf32>
    %82 = tpu.matmul %80, %81, %cst_36 {dimension_numbers = #tpu.dot_dimension_numbers<[1], [0], [0], [1], [0, 0, 1, 1], [], []>} : vector<16x16xbf16>, vector<16x32xbf16>, vector<16x32xf32> -> vector<16x32xf32>
    %83 = arith.addf %55, %82 : vector<16x32xf32>
    %c0_37 = arith.constant 0 : index
    %c0_38 = arith.constant 0 : index
    %84 = vector.load %arg11[%c0_37, %c0_38] : memref<1x32xf32, #tpu.memory_space<vmem>>, vector<1x32xf32>
    %85 = vector.broadcast %84 : vector<1x32xf32> to vector<16x32xf32>
    %86 = arith.addf %83, %85 : vector<16x32xf32>
    %87 = vector.shape_cast %0 : vector<2x8x32xf32> to vector<16x32xf32>
    %88 = arith.addf %87, %86 : vector<16x32xf32>
    %cst_39 = arith.constant dense<0.000000e+00> : vector<16xf32>
    %89 = vector.multi_reduction <add>, %88, %cst_39 [1] : vector<16x32xf32> to vector<16xf32>
    %90 = vector.shape_cast %89 : vector<16xf32> to vector<16x1xf32>
    %cst_40 = arith.constant 3.200000e+01 : f32
    %91 = vector.broadcast %cst_40 : f32 to vector<16x1xf32>
    %92 = arith.divf %90, %91 : vector<16x1xf32>
    %93 = vector.broadcast %92 : vector<16x1xf32> to vector<16x32xf32>
    %94 = arith.subf %88, %93 : vector<16x32xf32>
    %95 = arith.mulf %94, %94 : vector<16x32xf32>
    %cst_41 = arith.constant dense<0.000000e+00> : vector<16xf32>
    %96 = vector.multi_reduction <add>, %95, %cst_41 [1] : vector<16x32xf32> to vector<16xf32>
    %97 = vector.shape_cast %96 : vector<16xf32> to vector<16x1xf32>
    %cst_42 = arith.constant 3.200000e+01 : f32
    %98 = vector.broadcast %cst_42 : f32 to vector<16x1xf32>
    %99 = arith.divf %97, %98 : vector<16x1xf32>
    %100 = vector.broadcast %92 : vector<16x1xf32> to vector<16x32xf32>
    %101 = arith.subf %88, %100 : vector<16x32xf32>
    %cst_43 = arith.constant 9.99999974E-6 : f32
    %102 = vector.broadcast %cst_43 : f32 to vector<16x1xf32>
    %103 = arith.addf %99, %102 : vector<16x1xf32>
    %104 = math.rsqrt %103 : vector<16x1xf32>
    %105 = vector.broadcast %104 : vector<16x1xf32> to vector<16x32xf32>
    %106 = arith.mulf %101, %105 : vector<16x32xf32>
    %c0_44 = arith.constant 0 : index
    %c0_45 = arith.constant 0 : index
    %107 = vector.load %arg12[%c0_44, %c0_45] : memref<1x32xf32, #tpu.memory_space<vmem>>, vector<1x32xf32>
    %108 = vector.broadcast %107 : vector<1x32xf32> to vector<16x32xf32>
    %109 = arith.mulf %106, %108 : vector<16x32xf32>
    %c0_46 = arith.constant 0 : index
    %c0_47 = arith.constant 0 : index
    %110 = vector.load %arg13[%c0_46, %c0_47] : memref<1x32xf32, #tpu.memory_space<vmem>>, vector<1x32xf32>
    %111 = vector.broadcast %110 : vector<1x32xf32> to vector<16x32xf32>
    %112 = arith.addf %109, %111 : vector<16x32xf32>
    %113 = arith.truncf %112 : vector<16x32xf32> to vector<16x32xbf16>
    %c0_48 = arith.constant 0 : index
    %c0_49 = arith.constant 0 : index
    %114 = vector.load %arg14[%c0_48, %c0_49] : memref<32x64xbf16, #tpu.memory_space<vmem>>, vector<32x64xbf16>
    %cst_50 = arith.constant dense<0.000000e+00> : vector<16x64xf32>
    %115 = tpu.matmul %113, %114, %cst_50 {dimension_numbers = #tpu.dot_dimension_numbers<[1], [0], [0], [1], [0, 0, 1, 1], [], []>} : vector<16x32xbf16>, vector<32x64xbf16>, vector<16x64xf32> -> vector<16x64xf32>
    %c0_51 = arith.constant 0 : index
    %c0_52 = arith.constant 0 : index
    %116 = vector.load %arg15[%c0_51, %c0_52] : memref<1x64xf32, #tpu.memory_space<vmem>>, vector<1x64xf32>
    %117 = vector.broadcast %116 : vector<1x64xf32> to vector<16x64xf32>
    %118 = arith.addf %115, %117 : vector<16x64xf32>
    %cst_53 = arith.constant 0.000000e+00 : f32
    %119 = vector.broadcast %cst_53 : f32 to vector<16x64xf32>
    %120 = arith.maximumf %118, %119 : vector<16x64xf32>
    %121 = arith.truncf %120 : vector<16x64xf32> to vector<16x64xbf16>
    %c0_54 = arith.constant 0 : index
    %c0_55 = arith.constant 0 : index
    %122 = vector.load %arg16[%c0_54, %c0_55] : memref<64x32xbf16, #tpu.memory_space<vmem>>, vector<64x32xbf16>
    %cst_56 = arith.constant dense<0.000000e+00> : vector<16x32xf32>
    %123 = tpu.matmul %121, %122, %cst_56 {dimension_numbers = #tpu.dot_dimension_numbers<[1], [0], [0], [1], [0, 0, 1, 1], [], []>} : vector<16x64xbf16>, vector<64x32xbf16>, vector<16x32xf32> -> vector<16x32xf32>
    %c0_57 = arith.constant 0 : index
    %c0_58 = arith.constant 0 : index
    %124 = vector.load %arg17[%c0_57, %c0_58] : memref<1x32xf32, #tpu.memory_space<vmem>>, vector<1x32xf32>
    %125 = vector.broadcast %124 : vector<1x32xf32> to vector<16x32xf32>
    %126 = arith.addf %123, %125 : vector<16x32xf32>
    %127 = arith.addf %112, %126 : vector<16x32xf32>
    %cst_59 = arith.constant dense<0.000000e+00> : vector<16xf32>
    %128 = vector.multi_reduction <add>, %127, %cst_59 [1] : vector<16x32xf32> to vector<16xf32>
    %129 = vector.shape_cast %128 : vector<16xf32> to vector<16x1xf32>
    %cst_60 = arith.constant 3.200000e+01 : f32
    %130 = vector.broadcast %cst_60 : f32 to vector<16x1xf32>
    %131 = arith.divf %129, %130 : vector<16x1xf32>
    %132 = vector.broadcast %131 : vector<16x1xf32> to vector<16x32xf32>
    %133 = arith.subf %127, %132 : vector<16x32xf32>
    %134 = arith.mulf %133, %133 : vector<16x32xf32>
    %cst_61 = arith.constant dense<0.000000e+00> : vector<16xf32>
    %135 = vector.multi_reduction <add>, %134, %cst_61 [1] : vector<16x32xf32> to vector<16xf32>
    %136 = vector.shape_cast %135 : vector<16xf32> to vector<16x1xf32>
    %cst_62 = arith.constant 3.200000e+01 : f32
    %137 = vector.broadcast %cst_62 : f32 to vector<16x1xf32>
    %138 = arith.divf %136, %137 : vector<16x1xf32>
    %139 = vector.broadcast %131 : vector<16x1xf32> to vector<16x32xf32>
    %140 = arith.subf %127, %139 : vector<16x32xf32>
    %cst_63 = arith.constant 9.99999974E-6 : f32
    %141 = vector.broadcast %cst_63 : f32 to vector<16x1xf32>
    %142 = arith.addf %138, %141 : vector<16x1xf32>
    %143 = math.rsqrt %142 : vector<16x1xf32>
    %144 = vector.broadcast %143 : vector<16x1xf32> to vector<16x32xf32>
    %145 = arith.mulf %140, %144 : vector<16x32xf32>
    %c0_64 = arith.constant 0 : index
    %c0_65 = arith.constant 0 : index
    %146 = vector.load %arg18[%c0_64, %c0_65] : memref<1x32xf32, #tpu.memory_space<vmem>>, vector<1x32xf32>
    %147 = vector.broadcast %146 : vector<1x32xf32> to vector<16x32xf32>
    %148 = arith.mulf %145, %147 : vector<16x32xf32>
    %c0_66 = arith.constant 0 : index
    %c0_67 = arith.constant 0 : index
    %149 = vector.load %arg19[%c0_66, %c0_67] : memref<1x32xf32, #tpu.memory_space<vmem>>, vector<1x32xf32>
    %150 = vector.broadcast %149 : vector<1x32xf32> to vector<16x32xf32>
    %151 = arith.addf %148, %150 : vector<16x32xf32>
    %152 = vector.shape_cast %151 : vector<16x32xf32> to vector<2x8x32xf32>
    %c0_68 = arith.constant 0 : index
    %c0_69 = arith.constant 0 : index
    %c0_70 = arith.constant 0 : index
    %153 = vector.load %arg20[%c0_68, %c0_69, %c0_70] : memref<2x8x32xf32, #tpu.memory_space<vmem>>, vector<2x8x32xf32>
    tpu.vector_store %arg20[%c0_68, %c0_69, %c0_70], %152 {strides = array<i32>} : memref<2x8x32xf32, #tpu.memory_space<vmem>>, vector<2x8x32xf32>,
    return
  }
  func.func @transform_0(%arg0: i32) -> (i32, i32, i32) {
    %c0_i32 = arith.constant 0 : i32
    %c0_i32_0 = arith.constant 0 : i32
    %c0_i32_1 = arith.constant 0 : i32
    return %arg0, %c0_i32, %c0_i32_0 : i32, i32, i32
  }
  func.func @transform_1(%arg0: i32) -> (i32, i32, i32) {
    %c0_i32 = arith.constant 0 : i32
    %c0_i32_0 = arith.constant 0 : i32
    %c0_i32_1 = arith.constant 0 : i32
    return %arg0, %c0_i32, %c0_i32_0 : i32, i32, i32
  }
  func.func @transform_2(%arg0: i32) -> (i32, i32, i32) {
    %c0_i32 = arith.constant 0 : i32
    %c0_i32_0 = arith.constant 0 : i32
    %c0_i32_1 = arith.constant 0 : i32
    return %arg0, %c0_i32, %c0_i32_0 : i32, i32, i32
  }
  func.func @transform_3(%arg0: i32) -> (i32, i32) {
    %c0_i32 = arith.constant 0 : i32
    %c0_i32_0 = arith.constant 0 : i32
    %c0_i32_1 = arith.constant 0 : i32
    return %c0_i32, %c0_i32_0 : i32, i32
  }
  func.func @transform_4(%arg0: i32) -> (i32, i32) {
    %c0_i32 = arith.constant 0 : i32
    %c0_i32_0 = arith.constant 0 : i32
    %c0_i32_1 = arith.constant 0 : i32
    return %c0_i32, %c0_i32_0 : i32, i32
  }
  func.func @transform_5(%arg0: i32) -> (i32, i32) {
    %c0_i32 = arith.constant 0 : i32
    %c0_i32_0 = arith.constant 0 : i32
    %c0_i32_1 = arith.constant 0 : i32
    return %c0_i32, %c0_i32_0 : i32, i32
  }
  func.func @transform_6(%arg0: i32) -> (i32, i32) {
    %c0_i32 = arith.constant 0 : i32
    %c0_i32_0 = arith.constant 0 : i32
    %c0_i32_1 = arith.constant 0 : i32
    return %c0_i32, %c0_i32_0 : i32, i32
  }
  func.func @transform_7(%arg0: i32) -> (i32, i32) {
    %c0_i32 = arith.constant 0 : i32
    %c0_i32_0 = arith.constant 0 : i32
    %c0_i32_1 = arith.constant 0 : i32
    return %c0_i32, %c0_i32_0 : i32, i32
  }
  func.func @transform_8(%arg0: i32) -> (i32, i32) {
    %c0_i32 = arith.constant 0 : i32
    %c0_i32_0 = arith.constant 0 : i32
    %c0_i32_1 = arith.constant 0 : i32
    return %c0_i32, %c0_i32_0 : i32, i32
  }
  func.func @transform_9(%arg0: i32) -> (i32, i32) {
    %c0_i32 = arith.constant 0 : i32
    %c0_i32_0 = arith.constant 0 : i32
    %c0_i32_1 = arith.constant 0 : i32
    return %c0_i32, %c0_i32_0 : i32, i32
  }
  func.func @transform_10(%arg0: i32) -> (i32, i32) {
    %c0_i32 = arith.constant 0 : i32
    %c0_i32_0 = arith.constant 0 : i32
    %c0_i32_1 = arith.constant 0 : i32
    return %c0_i32, %c0_i32_0 : i32, i32
  }
  func.func @transform_11(%arg0: i32) -> (i32, i32) {
    %c0_i32 = arith.constant 0 : i32
    %c0_i32_0 = arith.constant 0 : i32
    %c0_i32_1 = arith.constant 0 : i32
    return %c0_i32, %c0_i32_0 : i32, i32
  }
  func.func @transform_12(%arg0: i32) -> (i32, i32) {
    %c0_i32 = arith.constant 0 : i32
    %c0_i32_0 = arith.constant 0 : i32
    %c0_i32_1 = arith.constant 0 : i32
    return %c0_i32, %c0_i32_0 : i32, i32
  }
  func.func @transform_13(%arg0: i32) -> (i32, i32) {
    %c0_i32 = arith.constant 0 : i32
    %c0_i32_0 = arith.constant 0 : i32
    %c0_i32_1 = arith.constant 0 : i32
    return %c0_i32, %c0_i32_0 : i32, i32
  }
  func.func @transform_14(%arg0: i32) -> (i32, i32) {
    %c0_i32 = arith.constant 0 : i32
    %c0_i32_0 = arith.constant 0 : i32
    %c0_i32_1 = arith.constant 0 : i32
    return %c0_i32, %c0_i32_0 : i32, i32
  }
  func.func @transform_15(%arg0: i32) -> (i32, i32) {
    %c0_i32 = arith.constant 0 : i32
    %c0_i32_0 = arith.constant 0 : i32
    %c0_i32_1 = arith.constant 0 : i32
    return %c0_i32, %c0_i32_0 : i32, i32
  }
  func.func @transform_16(%arg0: i32) -> (i32, i32) {
    %c0_i32 = arith.constant 0 : i32
    %c0_i32_0 = arith.constant 0 : i32
    %c0_i32_1 = arith.constant 0 : i32
    return %c0_i32, %c0_i32_0 : i32, i32
  }
  func.func @transform_17(%arg0: i32) -> (i32, i32) {
    %c0_i32 = arith.constant 0 : i32
    %c0_i32_0 = arith.constant 0 : i32
    %c0_i32_1 = arith.constant 0 : i32
    return %c0_i32, %c0_i32_0 : i32, i32
  }
  func.func @transform_18(%arg0: i32) -> (i32, i32) {
    %c0_i32 = arith.constant 0 : i32
    %c0_i32_0 = arith.constant 0 : i32
    %c0_i32_1 = arith.constant 0 : i32
    return %c0_i32, %c0_i32_0 : i32, i32
  }
  func.func @transform_19(%arg0: i32) -> (i32, i32, i32) {
    %c0_i32 = arith.constant 0 : i32
    %c0_i32_0 = arith.constant 0 : i32
    %c0_i32_1 = arith.constant 0 : i32
    return %arg0, %c0_i32, %c0_i32_0 : i32, i32, i32
  }
}

</mosaic_0001>

<bundles_post_ra>
// kernel: tpu_custom_call.1
= control target key start
LH: loop header
LB: loop body
LE: loop exit
PB: predicated region body
PF: predicated region fallthrough
CT: control target
= control target key end

     0   :  { %s2517_s0 = inlined_call_operand.vmem [shape: f32[4,8,32], index: 0, kind: input, shape index: {}]   ;;  %s2518_s1 = inlined_call_operand.hbm [shape: f32[4,8,32], index: 1, kind: input, shape index: {}]   ;;  %s2519_s2 = inlined_call_operand.hbm [shape: f32[4,1,8], index: 2, kind: input, shape index: {}]   ;;  %s2520_s3 = inlined_call_operand.vmem [shape: bf16[32,32], index: 3, kind: input, shape index: {}]   ;;  %s2521_s4 = inlined_call_operand.hbm [shape: bf16[32,32], index: 4, kind: input, shape index: {}]   ;;  %s2522_s5 = inlined_call_operand.hbm [shape: bf16[32,32], index: 5, kind: input, shape index: {}]   ;;  %s2523_s6 = inlined_call_operand.vmem [shape: f32[1,32], index: 6, kind: input, shape index: {}]   ;;  %s2524_s7 = inlined_call_operand.vmem [shape: f32[1,32], index: 7, kind: input, shape index: {}]   ;;  %s2525_s8 = inlined_call_operand.vmem [shape: f32[1,32], index: 8, kind: input, shape index: {}]   ;;  %s2526_s9 = inlined_call_operand.hbm [shape: bf16[32,32], index: 9, kind: input, shape index: {}]   ;;  %s2527_s10 = inlined_call_operand.vmem [shape: f32[1,32], index: 10, kind: input, shape index: {}]   ;;  %s2528_s11 = inlined_call_operand.vmem [shape: f32[1,32], index: 11, kind: input, shape index: {}]   ;;  %s2529_s12 = inlined_call_operand.vmem [shape: f32[1,32], index: 12, kind: input, shape index: {}]   ;;  %s2530_s13 = inlined_call_operand.hbm [shape: bf16[32,64], index: 13, kind: input, shape index: {}]   ;;  %s2531_s14 = inlined_call_operand.vmem [shape: f32[1,64], index: 14, kind: input, shape index: {}]   ;;  %s2532_s15 = inlined_call_operand.vmem [shape: bf16[64,32], index: 15, kind: input, shape index: {}]   ;;  %s2533_s16 = inlined_call_operand.vmem [shape: f32[1,32], index: 16, kind: input, shape index: {}]   ;;  %s2534_s17 = inlined_call_operand.vmem [shape: f32[1,32], index: 17, kind: input, shape index: {}]   ;;  %s2535_s18 = inlined_call_operand.vmem [shape: f32[1,32], index: 18, kind: input, shape index: {}]   ;;  %s2536_s19 = inlined_call_operand.hbm [shape: f32[4,8,32], index: 19, kind: output, shape index: {}]  }
   0x1   :  { %2550 = sst [smem:[#allocation26_spill]] %s2517_s0 }
   0x2   :  { %2551 = sst [smem:[#allocation27_spill]] %s2518_s1 }
   0x3   :  { %2552 = sst [smem:[#allocation28_spill]] %s2519_s2 }
   0x4   :  { %2553 = sst [smem:[#allocation29_spill]] %s2520_s3 }
   0x5   :  { %2554 = sst [smem:[#allocation30_spill]] %s2521_s4 }
   0x6   :  { %2555 = sst [smem:[#allocation31_spill]] %s2522_s5 }
   0x7   :  { %2556 = sst [smem:[#allocation32_spill]] %s2526_s9 }
   0x8   :  { %2557 = sst [smem:[#allocation33_spill]] %s2530_s13 }
   0x9   :  { %2558 = sst [smem:[#allocation34_spill]] %s2531_s14 }
   0xa   :  { %2559 = sst [smem:[#allocation35_spill]] %s2532_s15 }
   0xb   :  { %2560 = sst [smem:[#allocation36_spill]] %s2533_s16 }
   0xc   :  { %2561 = sst [smem:[#allocation37_spill]] %s2534_s17 }
   0xd   :  { %2562 = sst [smem:[#allocation38_spill]] %s2535_s18 }
   0xe   :  { %2563 = sst [smem:[#allocation39_spill]] %s2536_s19 }
   0xf   :  { %24 = vsyncpa [#allocation3], 0 }
  0x10   :  { %26 = vsyncpa [#allocation3 + $0x1], 0 }
  0x11   :  { %27 = vsyncpa [#allocation6], 0 }
  0x12   :  { %29 = vsyncpa [#allocation6 + $0x1], 0 }
  0x13   :  { %30 = vsyncpa [#allocation9], 0 }
  0x14   :  { %31 = vsyncpa [#allocation12], 0 }
  0x15   :  { %32 = vsyncpa [#allocation4], 0 }
  0x16   :  { %34 = vsyncpa [#allocation4 + $0x1], 0  ;;  %s2194_s0 = smov 0   ;;  %s2196_s30 = smov 0  }
  0x17   :  { %s2198_s20 = smov 0   ;;  %s2200_s21 = smov 0  }
  0x18 LB: > { %2564 = sst [smem:[#allocation20_spill]] %s2066_s0  ;;  %s2215_s1 = sadd.s32 4294967295, %s2078_s21   ;;  %s2078_s21 = sphi %s2200_s21, %s2596_s21   ;;  %s2074_s20 = sphi %s2198_s20, %s2598_s20   ;;  %s2070_s30 = sphi %s2196_s30, %s2600_s30   ;;  %s2066_s0 = sphi %s2194_s0, %s2599_s0  }
  0x19   : > { %2565 = sst [smem:[#allocation21_spill]] %s2074_s20  ;;  %s1562_s22 = sadd.s32 4294967294, %s2078_s21  }
  0x1a   : > { %p86_p0 = scmp.ne.s32.totalorder %s2070_s30, %s2066_s0  ;;  %p87_p1 = scmp.eq.s32.totalorder %s2215_s1, 0 }
  0x1b   : > { %p472_p2 = scmp.eq.s32.totalorder %s2215_s1, 1  ;;  %p478_p3 = scmp.eq.s32.totalorder %s1562_s22, 1 }
  0x1c   : > { %p2224_p4 = por %p87_p1, %p86_p0  ;;  %p1563_p5 = scmp.ge.s32.totalorder %s2078_s21, 1 }
  0x1d   : > { %p2229_p6 = por %p478_p3, %p86_p0  ;;  %p485_p7 = scmp.lt.s32.totalorder %s2078_s21, 3 }
  0x1e   : > { %s2569_s4 = sld [smem:[#allocation30_spill]]  ;;  %s2080_s27 = smov [#allocation7]  }
  0x1f   : > { %s2567_s23 = scalar_select %p2229_p6, 1, 0 }
  0x20   : > { %p2237_p8 = pnand %p1563_p5, %p485_p7  ;;  %s501_s28 = sshll.u32 %s2080_s27, 4  ;;  %s502_s28 = int_to_ptr.vmem [resolvable:$true] %s501_s28 }
  0x21   : > { %2568 = sst [smem:[#allocation22_spill]] %s2567_s23  ;;  %s2082_s23 = smov 4  }
  0x22   : > { %p1698_p9 = pneg %p2237_p8  ;;  %s2572_s5 = sld [smem:[#allocation31_spill]] }
  0x23   : > { %s2083_s27 = smov [#allocation8]   ;;  %s2573_s9 = sld [smem:[#allocation32_spill]] }
  0x24   : > { %s499_s3 = sshll.u32 %s2569_s4, 4  ;;  %p2245_p10 = pnand %p1698_p9, %p87_p1  ;;  %s500_s3 = int_to_ptr.hbm [resolvable:$true] %s499_s3 }
  0x25   : > { %s2081_s4 = smov 64   ;;  %s515_s0 = sshll.u32 %s2083_s27, 4  ;;  %s516_s0 = int_to_ptr.vmem [resolvable:$true] %s515_s0 }
  0x26   : > { %1701 = dma.hbm_to_vmem [thread:$0]  (!%p2245_p10), %s500_s3, 256, %s502_s28, [#allocation6], %s2081_s4, %s2081_s4, %s2082_s23  }
  0x27   : > { %s2574_s13 = sld [smem:[#allocation33_spill]]  ;;  %s2084_s28 = smov [#allocation10]  }
  0x28   : > { %s513_s25 = sshll.u32 %s2572_s5, 4  ;;  %s538_s27 = sshll.u32 %s2084_s28, 4  ;;  %s514_s25 = int_to_ptr.hbm [resolvable:$true] %s513_s25  ;;  %s539_s27 = int_to_ptr.vmem [resolvable:$true] %s538_s27 }
  0x29   : > { %s536_s17 = sshll.u32 %s2573_s9, 4  ;;  %s2085_s18 = smov [#allocation11]   ;;  %s537_s17 = int_to_ptr.hbm [resolvable:$true] %s536_s17 }
  0x2a   : > { %1704 = dma.hbm_to_vmem [thread:$0]  (!%p2245_p10), %s514_s25, 256, %s516_s0, [#allocation9], %s2081_s4, %s2081_s4, %s2082_s23  }
  0x2b   : > { %1707 = dma.hbm_to_vmem [thread:$0]  (!%p2245_p10), %s537_s17, 256, %s539_s27, [#allocation9], %s2081_s4, %s2081_s4, %s2082_s23  }
  0x2c   : > { %s561_s19 = sshll.u32 %s2085_s18, 4  ;;  %s2268_s0 = sadd.s32 1, %s2078_s21   ;;  %s562_s19 = int_to_ptr.vmem [resolvable:$true] %s561_s19 }
  0x2d   : > { %s559_s3 = sshll.u32 %s2574_s13, 4  ;;  %2575 = sst [smem:[#allocation23_spill]] %s2268_s0  ;;  %s560_s3 = int_to_ptr.hbm [resolvable:$true] %s559_s3 }
  0x2e   : > { %1710 = dma.hbm_to_vmem [thread:$0]  (!%p2245_p10), %s560_s3, 256, %s562_s19, [#allocation12], %s2081_s4, %s2081_s4, %s2082_s23  }
  0x2f   : > { %s73_s25 = sadd.s32 1, %s2074_s20  ;;  %s70_s22 = ssub.s32 %s2078_s21, %s2268_s0 }
  0x30   : > { %p80_p12 = scmp.ne.s32.totalorder %s2074_s20, %s2070_s30  ;;  %p71_p13 = scmp.eq.s32.totalorder %s70_s22, 0 }
  0x31   : > { %p81_p0 = scmp.eq.s32.totalorder %s2078_s21, 0  ;;  %p1726_p5 = scmp.lt.s32.totalorder %s2078_s21, 2 }
  0x32   : > { %p2278_p3 = por %p472_p2, %p80_p12  ;;  %s2287_s29 = sand.u32 1, %s2074_s20  }
  0x33   : > { %s2284_s17 = scalar_select %p71_p13, %s2074_s20, %s73_s25  }
  0x34   : > { %s2576_s24 = scalar_select %p2278_p3, 1, 0 }
  0x35   : > { %2578 = sst [smem:[#allocation25_spill]] %s2284_s17  ;;  %p82_p7 = por %p81_p0, %p80_p12 }
  0x36   : > { %2577 = sst [smem:[#allocation24_spill]] %s2576_s24  ;;  %s1569_s4 = sshll.u32 %s2287_s29, 4 }
  0x37   : > { %s1660_s23 = sshll.u32 %s2078_s21, 4  ;;  %s2579_s27 = sld [smem:[#allocation27_spill]] }
  0x38   : > { %s603_s19 = scalar_lea.vmem [#allocation2], %s1569_s4  ;;  %p2294_p2 = pnand %p1726_p5, %p82_p7 }
  0x39   : > { %s611_s22 = sshll.u32 %s603_s19, 4  ;;  %s621_s25 = sand.u32 1, %s2078_s21   ;;  %s612_s22 = int_to_ptr.vmem [resolvable:$true] %s611_s22 }
  0x3a   : > { %s600_s13 = scalar_lea.sflag [#allocation3], %s2287_s29  ;;  %p1940_p10 = pneg %p2294_p2 }
  0x3d   : > { %s608_s18 = scalar_lea.hbm %s2579_s27, %s1660_s23  ;;  %s1943_s3 = scalar_lea.hbm %s2579_s27, 32 }
  0x3e   : > { %s609_s5 = sshll.u32 %s608_s18, 4  ;;  %s610_s5 = int_to_ptr.hbm [resolvable:$true] %s609_s5 }
  0x3f   : > { %s1936_s17 = sshra.s32 %s610_s5, 4  ;;  %s1937_s17 = int_to_ptr.hbm [resolvable:$true] %s1936_s17 }
  0x40   : > { %s1938_s20 = scalar_lea.hbm %s1937_s17, 16  ;;  %p1944_p0 = scmp.lt.s32.totalorder %s1937_s17, %s2579_s27 }
  0x41   : > { %p1939_p9 = scmp.ne.s32.totalorder %s1937_s17, %s1938_s20  ;;  %p1945_p5 = scmp.lt.s32.totalorder %s1943_s3, %s1938_s20 }
  0x43   : > { %p1941_p12 = pnand %p1940_p10, %p1939_p9  ;;  %p1946_p7 = por %p1945_p5, %p1944_p0 }
  0x45   : > { %p1942_p13 = pneg %p1941_p12 }
  0x47   : > { %p1947_p11 = pnand %p1946_p7, %p1942_p13 }
  0x49   : > { %1950 = shalt.err (!%p1947_p11)
}
  0x4a   : > { %s2086_s19 = smov 128   ;;  %s2087_s0 = smov 8  }
  0x4b   : > { %1714 = dma.hbm_to_vmem [thread:$0]  (!%p2294_p2), %s610_s5, 256, %s612_s22, %s600_s13, %s2086_s19, %s2086_s19, %s2087_s0  }
  0x4c   : > { %s1572_s24 = sshll.u32 %s2287_s29, 1  ;;  %s1573_s16 = sshll.u32 %s2078_s21, 1 }
  0x4d   : > { %s2581_s14 = sld [smem:[#allocation28_spill]]  ;;  %s625_s28 = scalar_lea.vmem [#allocation5], %s1572_s24 }
  0x4e   : > { %s632_s17 = sshll.u32 %s625_s28, 4  ;;  %s622_s3 = scalar_lea.sflag [#allocation6], %s621_s25  ;;  %s633_s17 = int_to_ptr.vmem [resolvable:$true] %s632_s17 }
  0x53   : > { %s629_s15 = scalar_lea.hbm %s2581_s14, %s1573_s16  ;;  %s1973_s0 = scalar_lea.hbm %s2581_s14, 4 }
  0x54   : > { %s630_s20 = sshll.u32 %s629_s15, 4  ;;  %s631_s20 = int_to_ptr.hbm [resolvable:$true] %s630_s20 }
  0x55   : > { %s1966_s18 = sshra.s32 %s631_s20, 4  ;;  %s1967_s18 = int_to_ptr.hbm [resolvable:$true] %s1966_s18 }
  0x56   : > { %s1968_s27 = scalar_lea.hbm %s1967_s18, 2  ;;  %p1974_p13 = scmp.lt.s32.totalorder %s1967_s18, %s2581_s14 }
  0x57   : > { %p1969_p11 = scmp.ne.s32.totalorder %s1967_s18, %s1968_s27  ;;  %p1975_p0 = scmp.lt.s32.totalorder %s1973_s0, %s1968_s27 }
  0x59   : > { %p1971_p9 = pnand %p1969_p11, %p1940_p10  ;;  %p1976_p5 = por %p1975_p0, %p1974_p13 }
  0x5b   : > { %p1972_p12 = pneg %p1971_p9 }
  0x5d   : > { %p1977_p7 = pnand %p1976_p5, %p1972_p12 }
  0x5f   : > { %1980 = shalt.err (!%p1977_p7)
}
  0x60   : > { %s2088_s15 = smov 16   ;;  %s2089_s24 = smov 1  }
  0x61   : > { %1717 = dma.hbm_to_vmem [thread:$0]  (!%p2294_p2), %s631_s20, 32, %s633_s17, %s622_s3, %s2088_s15, %s2088_s15, %s2089_s24  }
  0x62   : > { %644 = sbr.rel (%p2237_p8) target bundleno = 1888 (0x760), region = 96  ;;  %s2332_s22 = sand.u32 (!%p2237_p8), 1, %s2070_s30  }
  0x63   : > { %s1575_s25 = sshll.u32 (!%p2237_p8), %s2332_s22, 4  ;;  %s647_s27 = scalar_lea.sflag (!%p2237_p8), [#allocation3], %s2332_s22 }
  0x64   : > { %s650_s19 = scalar_lea.vmem (!%p2237_p8), [#allocation2], %s1575_s25 }
  0x67   : > { %2041 = dma.done.wait (%p2224_p4), %s647_s27, 256  }
  0x68   : > { %2043 = vsyncadd (%p2224_p4), %s647_s27, 4294967040  ;;  %s656_s9 = sand.u32 1, %s2215_s1   ;;  %s1576_s26 = sshll.u32 %s2332_s22, 1 }
  0x69   : > { %s657_s4 = scalar_lea.sflag [#allocation6], %s656_s9  ;;  %s2344_s23 = scalar_lea.vmem [#allocation5], %s1576_s26 }
  0x6a   : > { %2045 = dma.done.wait (%p2224_p4), %s657_s4, 32  }
  0x6b   : > { %2047 = vsyncadd (%p2224_p4), %s657_s4, 4294967264 }
  0x6c   : > { %2049 = dma.done.wait (%p87_p1), [#allocation6], 256  }
  0x6d   : > { %2051 = vsyncadd (%p87_p1), [#allocation6], 4294967040 }
  0x6e   : > { %2053 = dma.done.wait (%p87_p1), [#allocation9], 512  }
  0x6f   : > { %2055 = vsyncadd (%p87_p1), [#allocation9], 4294966784 }
  0x70   : > { %2057 = dma.done.wait (%p87_p1), [#allocation12], 256  }
  0x71   : > { %2059 = vsyncadd (%p87_p1), [#allocation12], 4294967040  ;;  %s1582_s2 = sshll.u32 %s2215_s1, 1  ;;  %s2582_s3 = sld [smem:[#allocation26_spill]]  ;;  %v1664_v1 = vld [vmem:[#allocation7 + $0x8] sm:$0xff]  ;;  %v1663_v3 = vld [vmem:[#allocation7] sm:$0xff] }
  0x72   : > { %p747_p4 = scmp.lt.s32.totalorder %s1582_s2, 3  ;;  %s2583_s0 = sld [smem:[#allocation29_spill]]  ;;  %830 = vmatpush.bf16.msra.mxu1 %v1664_v1  ;;  %v758_v6 = vld [vmem:[%s650_s19] sm:$0xff]  ;;  %v759_v7 = vld [vmem:[%s650_s19 + $0x8] sm:$0xff]  ;;  %vm786_vm0 = vcmask 261120   ;;  %vm893_vm1 = vcmask 130048  }
  0x73   : > { %v1778_v11 = vld [vmem:[%s2523_s6] ss:$0 sm:$0xff]  ;;  %s2090_s19 = smov 112   ;;  %v1665_v40 = vld [vmem:[#allocation8] sm:$0xff]  ;;  %v1781_v46 = vld [vmem:[%s2344_s23 + $0x1] ss:$0 sm:$0xff] }
  0x74   : > { %s2602_s2 = smov (!%p747_p4, %s1582_s2), 3  ;;  %v1779_v12 = vld [vmem:[%s2524_s7] ss:$0 sm:$0xff]  ;;  %vm932_vm2 = vcmask 64512   ;;  %vm960_vm3 = vcmask 1043456   ;;  %vm1322_vm11 = vcmask 523264  }
  0x75   : > { %s1583_s28 = sshll.u32 %s2602_s2, 3  ;;  %v1666_v39 = vld [vmem:[#allocation8 + $0x8] sm:$0xff]  ;;  %s2587_s2 = sld [smem:[#allocation34_spill]] }
  0x76   : > { %831 = vmatpush.bf16.msra.mxu1 %v1663_v3  ;;  %867 = vmatpush.bf16.msra.mxu2 %v1666_v39  ;;  %v1780_v50 = vld [vmem:[%s2344_s23] ss:$0 sm:$0xff]  ;;  %s2588_s20 = sld [smem:[#allocation36_spill]]  ;;  %s1675_s24 = sshll.u32 %s2215_s1, 4 }
  0x77   : > { %s750_s18 = scalar_lea.vmem %s2582_s3, %s1583_s28  ;;  %s2589_s5 = sld [smem:[#allocation37_spill]] }
  0x78   : > { %s2584_s29 = smov %s2583_s0  ;;  %v1662_v0 = vld [vmem:[%s2583_s0 + $0x8] sm:$0xff]  ;;  %v2372_v4 = vld [vmem:[%s750_s18] sm:$0xff]  ;;  %s2585_s0 = sld [smem:[#allocation35_spill]] }
  0x79   : > { %v1661_v2 = vld [vmem:[%s2584_s29] sm:$0xff]  ;;  %v2374_v5 = vld [vmem:[%s750_s18 + $0x8] sm:$0xff]  ;;  %796 = vmatpush.bf16.msra.mxu0 %v1662_v0  ;;  %v760_v8 = vadd.f32 %v758_v6, %v2372_v4  ;;  %s2590_s15 = sld [smem:[#allocation38_spill]]  ;;  %s745_s4 = scalar_lea.vmem [#allocation13], %s1575_s25 }
  0x7a   : > { %v761_v9 = vadd.f32 %v759_v7, %v2374_v5  ;;  %v765_v43 = vpack.c.bf16 %v2374_v5, %v2372_v4  ;;  %868 = vmatpush.bf16.msra.mxu2 %v1665_v40  ;;  %s2591_s26 = sld [smem:[#allocation39_spill]]  ;;  %s1401_s28 = scalar_lea.sflag [#allocation4], %s2332_s22 }
  0x7c   : > { %v764_v10 = vpack.c.bf16 %v761_v9, %v760_v8 }
  0x7d   : > { %797 = vmatpush.bf16.msra.mxu0 %v1661_v2  ;;  %1610 = vmatmul.msk.bf16.vlgmr.msra.gmra.mxu2 %vm786_vm0, %v765_v43 }
  0x7e   : > { %1601 = vmatmul.msk.bf16.vlgmr.msra.gmra.mxu1 %vm786_vm0, %v764_v10  ;;  %s2586_s16 = smov %s2585_s0 }
  0x80   : > { %1592 = vmatmul.msk.bf16.vlgmr.msra.gmra.mxu0 %vm786_vm0, %v764_v10  ;;  %s2016_s18 = scalar_lea.hbm %s2591_s26, 32 }
  0xfb   : > { %v833_v14 = vpop.f32.mrf.mxu1 }
  0xfc   : > { %v834_v16 = vadd.f32 %v1779_v12, %v833_v14 }
  0xfd   : > { %v799_v13 = vpop.f32.mrf.mxu0 }
  0xfe   : > { %v800_v15 = vadd.f32 %v1778_v11, %v799_v13  ;;  %v883_v18 = vpack.c.bf16 %v834_v16, %v834_v16 }
 0x100   : > { %v879_v17 = vmul.f32 0.25, %v800_v15  ;;  %v898_v20 = vsel %vm893_vm1, %v883_v18, 0  ;;  %v1003_v21 = vunpack.c.l.b16 %v883_v18  ;;  %v870_v13 = vpop.f32.mrf.mxu2 }
 0x101   : > { %907 = vmatpush.bf16.xpose.msra.mxu3 %v898_v20 }
 0x102   : > { %v881_v19 = vpack.c.bf16 %v879_v17, %v879_v17  ;;  %v1004_v22 = vpack.c.b16 %v1003_v21, %v1003_v21 }
 0x103   : > { %v835_v25 = vpop.f32.mrf.mxu1 }
 0x104   : > { %v998_v23 = vunpack.c.l.b16 %v881_v19  ;;  %v836_v27 = vadd.f32 %v1779_v12, %v835_v25  ;;  %1005 = vrot.lane.b32.xlu0 %v1004_v22, %s2090_s19  ;;  %v1782_v12 = vld [vmem:[%s2525_s8] ss:$0 sm:$0xff] }
 0x105   : > { %v801_v24 = vpop.f32.mrf.mxu0  ;;  %v871_v14 = vadd.f32 %v1782_v12, %v870_v13 }
 0x106   : > { %v802_v26 = vadd.f32 %v1778_v11, %v801_v24  ;;  %v999_v28 = vpack.c.b16 %v998_v23, %v998_v23  ;;  %v884_v30 = vpack.c.bf16 %v836_v27, %v836_v27 }
 0x107   : > { %v885_v15 = vpack.c.bf16 %v871_v14, %v871_v14 }
 0x108   : > { %v880_v29 = vmul.f32 0.25, %v802_v26  ;;  %1000 = vrot.lane.b32.xlu1 %v999_v28, %s2090_s19  ;;  %v1032_v32 = vunpack.c.l.b16 %v884_v30  ;;  %1611 = vmatmul.msk.bf16.vlgmr.msra.gmra.mxu3 %vm893_vm1, %v881_v19  ;;  %v917_v33 = vsel %vm893_vm1, %v884_v30, 0  ;;  %v872_v18 = vpop.f32.mrf.mxu2 }
 0x109   : > { %926 = vmatpush.bf16.xpose.msrb.mxu0 %v917_v33  ;;  %v1080_v16 = vunpack.c.l.b16 %v885_v15  ;;  %v962_v19 = vsel %vm960_vm3, %v885_v15, 0  ;;  %v873_v20 = vadd.f32 %v1782_v12, %v872_v18  ;;  %v2091_v18 = vmov 32.0  }
 0x10a   : > { %v882_v31 = vpack.c.bf16 %v880_v29, %v880_v29  ;;  %v1033_v35 = vpack.c.b16 %v1032_v32, %v1032_v32  ;;  %971 = vmatpush.bf16.msrb.mxu1 %v962_v19 }
 0x10b   : > { %v1081_v17 = vpack.c.b16 %v1080_v16, %v1080_v16  ;;  %v886_v21 = vpack.c.bf16 %v873_v20, %v873_v20 }
 0x10c   : > { %v1027_v34 = vunpack.c.l.b16 %v882_v31  ;;  %1034 = vrot.lane.b32.xlu0 %v1033_v35, %s2090_s19 }
 0x10d   : > { %v981_v23 = vsel %vm960_vm3, %v886_v21, 0 }
 0x10e   : > { %v1028_v36 = vpack.c.b16 %v1027_v34, %v1027_v34  ;;  %990 = vmatpush.bf16.msrb.mxu2 %v981_v23 }
 0x110   : > { %1029 = vrot.lane.b32.xlu1 %v1028_v36, %s2090_s19  ;;  %1612 = vmatmul.msk.bf16.vlgmr.msrb.gmra.mxu0 %vm893_vm1, %v882_v31 }
 0x176   : > { %v1006_v37 = vpop.permute.xlu0 %1005 }
 0x177   : > { %v1011_v38 = vsel %vm893_vm1, %v1006_v37, 0 }
 0x178   : > { %1020 = vmatpush.bf16.xpose.msrb.mxu3 %v1011_v38 }
 0x17a   : > { %v1001_v41 = vpop.permute.xlu1 %1000 }
 0x17e   : > { %v1035_v42 = vpop.permute.xlu0 %1034 }
 0x17f   : > { %v1040_v44 = vsel %vm893_vm1, %v1035_v42, 0  ;;  %1615 = vmatmul.msk.bf16.vlgmr.msrb.gmra.mxu3 %vm893_vm1, %v1001_v41  ;;  %v1104_v41 = vunpack.c.l.b16 %v886_v21 }
 0x180   : > { %1049 = vmatpush.bf16.xpose.msra.mxu0 %v1040_v44 }
 0x181   : > { %v1105_v42 = vpack.c.b16 %v1104_v41, %v1104_v41 }
 0x182   : > { %v1030_v45 = vpop.permute.xlu1 %1029 }
 0x187   : > { %1616 = vmatmul.msk.bf16.vlgmr.msra.gmra.mxu0 %vm893_vm1, %v1030_v45 }
 0x18b   : > { %v909_v47 = vpop.f32.mrf.mxu3 }
 0x18c   : > { %v910_v53 = vadd.f32 %v1780_v50, %v909_v47 }
 0x18d   : > { %v928_v48 = vpop.f32.mrf.mxu0 }
 0x18e   : > { %v929_v49 = vadd.f32 %v1781_v46, %v928_v48  ;;  %v933_v55 = vsel %vm932_vm2, %v910_v53, -inf }
 0x190   : > { %v936_v51 = vsel %vm932_vm2, %v929_v49, -inf }
 0x191   : > { %937 = vmax.xlane.f32.xlu2 %v936_v51 }
 0x193   : > { %v911_v52 = vpop.f32.mrf.mxu3 }
 0x195   : > { %v930_v54 = vpop.f32.mrf.mxu0 }
 0x199   : > { %934 = vmax.xlane.f32.xlu2 %v933_v55 }
 0x202   : > { %v1022_v56 = vpop.f32.mrf.mxu3 }
 0x203   : > { %v1023_v57 = vadd.f32 %v1780_v50, %v1022_v56 }
 0x204   : > { %v938_v58 = vpop.xlane.xlu2 %937  ;;  %v1051_v59 = vpop.f32.mrf.mxu0 }
 0x205   : > { %v1052_v60 = vadd.f32 %v1781_v46, %v1051_v59  ;;  %v1055_v61 = vsel %vm932_vm2, %v1023_v57, -inf  ;;  %v940_v3 = vsub.f32 %v929_v49, %v938_v58  ;;  %v1667_v49 = vld [vmem:[#allocation10] sm:$0xff] }
 0x206   : > { %1056 = vmax.xlane.f32.xlu1 %v1055_v61  ;;  %1167 = vmatpush.bf16.msrb.mxu0 %v1667_v49  ;;  %v1668_v61 = vld [vmem:[#allocation10 + $0x8] sm:$0xff] }
 0x207   : > { %v1058_v62 = vsel %vm932_vm2, %v1052_v60, -inf  ;;  %v943_v7 = vmul.f32 1.442695, %v940_v3  ;;  %1144 = vmatpush.bf16.msra.mxu3 %v1668_v61 }
 0x208   : > { %1059 = vmax.xlane.f32.xlu0 %v1058_v62 }
 0x20a   : > { %v1024_v63 = vpop.f32.mrf.mxu3 }
 0x20c   : > { %v1053_v0 = vpop.f32.mrf.mxu0  ;;  %v935_v1 = vpop.xlane.xlu2 %934 }
 0x20d   : > { %v939_v2 = vsub.f32 %v910_v53, %v935_v1 }
 0x20f   : > { %v941_v6 = vmul.f32 1.442695, %v939_v2 }
 0x211   : > { %1790 = vpow2.f32 %v941_v6  ;;  %v1783_v6 = vld [vmem:[%s2527_s10] ss:$0 sm:$0xff] }
 0x212   : > { %1792 = vpow2.f32 %v943_v7 }
 0x217   : > { %v1791_v8 = vpop.eup %1790 }
 0x218   : > { %v945_v9 = vsel %vm932_vm2, %v1791_v8, 0.0  ;;  %v1793_v10 = vpop.eup %1792 }
 0x219   : > { %946 = vadd.xlane.f32.xlu2 %v945_v9  ;;  %v948_v11 = vsel %vm932_vm2, %v1793_v10, 0.0 }
 0x21c   : > { %1082 = vrot.lane.b32.xlu0 %v1081_v17, %s2090_s19 }
 0x221   : > { %949 = vadd.xlane.f32.xlu2 %v948_v11 }
 0x279   : > { %v1057_v22 = vpop.xlane.xlu1 %1056 }
 0x27a   : > { %v1061_v24 = vsub.f32 %v1023_v57, %v1057_v22 }
 0x27b   : > { %v1060_v25 = vpop.xlane.xlu0 %1059 }
 0x27c   : > { %v1063_v26 = vmul.f32 1.442695, %v1061_v24  ;;  %v1062_v27 = vsub.f32 %v1052_v60, %v1060_v25 }
 0x27e   : > { %1794 = vpow2.f32 %v1063_v26  ;;  %v1065_v28 = vmul.f32 1.442695, %v1062_v27 }
 0x280   : > { %1796 = vpow2.f32 %v1065_v28 }
 0x284   : > { %v1795_v29 = vpop.eup %1794 }
 0x285   : > { %v1067_v30 = vsel %vm932_vm2, %v1795_v29, 0.0 }
 0x286   : > { %1068 = vadd.xlane.f32.xlu2 %v1067_v30  ;;  %v1797_v31 = vpop.eup %1796 }
 0x287   : > { %v1070_v33 = vsel %vm932_vm2, %v1797_v31, 0.0 }
 0x28c   : > { %v947_v32 = vpop.xlane.xlu2 %946 }
 0x28d   : > { %1798 = vrcp.f32 %v947_v32 }
 0x28e   : > { %1071 = vadd.xlane.f32.xlu2 %v1070_v33  ;;  %v1083_v43 = vpop.permute.xlu0 %1082  ;;  %v1670_v33 = vld [vmem:[#allocation11 + $0x8] sm:$0xff] }
 0x28f   : > { %v1088_v44 = vsel %vm960_vm3, %v1083_v43, 0 }
 0x290   : > { %1097 = vmatpush.bf16.msra.mxu1 %v1088_v44 }
 0x293   : > { %v1799_v34 = vpop.eup %1798 }
 0x294   : > { %v953_v35 = vmul.f32 %v1799_v34, %v1791_v8  ;;  %v950_v36 = vpop.xlane.xlu2 %949 }
 0x295   : > { %1800 = vrcp.f32 %v950_v36  ;;  %v1669_v36 = vld [vmem:[#allocation11] sm:$0xff] }
 0x296   : > { %v955_v37 = vpack.c.bf16 %v953_v35, %v953_v35 }
 0x298   : > { %1613 = vmatmul.msk.bf16.vlgmr.msrb.gmra.mxu1 %vm932_vm2, %v955_v37 }
 0x299   : > { %1275 = vmatpush.bf16.msrb.mxu1 %v1670_v33 }
 0x29b   : > { %v1801_v38 = vpop.eup %1800 }
 0x29c   : > { %v954_v39 = vmul.f32 %v1801_v38, %v1793_v10 }
 0x29d   : > { %1276 = vmatpush.bf16.msrb.mxu1 %v1669_v36 }
 0x29e   : > { %v956_v40 = vpack.c.bf16 %v954_v39, %v954_v39 }
 0x2a0   : > { %1614 = vmatmul.msk.bf16.vlgmr.msrb.gmra.mxu2 %vm932_vm2, %v956_v40 }
 0x2a6   : > { %1106 = vrot.lane.b32.xlu2 %v1105_v42, %s2090_s19  ;;  %s1412_s19 = scalar_lea.hbm %s2591_s26, %s1675_s24 }
 0x2a7   : > { %s1415_s1 = sshll.u32 %s1412_s19, 4  ;;  %s1416_s1 = int_to_ptr.hbm [resolvable:$true] %s1415_s1 }
 0x2a8   : > { %s2010_s17 = sshra.s32 %s1416_s1, 4  ;;  %s2011_s17 = int_to_ptr.hbm [resolvable:$true] %s2010_s17 }
 0x2a9   : > { %p2017_p10 = scmp.lt.s32.totalorder %s2011_s17, %s2591_s26 }
 0x2f9   : > { %v1069_v45 = vpop.xlane.xlu2 %1068 }
 0x2fa   : > { %1802 = vrcp.f32 %v1069_v45 }
 0x300   : > { %v1803_v46 = vpop.eup %1802 }
 0x301   : > { %v1075_v47 = vmul.f32 %v1803_v46, %v1795_v29  ;;  %v1072_v48 = vpop.xlane.xlu2 %1071 }
 0x302   : > { %1804 = vrcp.f32 %v1072_v48 }
 0x303   : > { %v1077_v50 = vpack.c.bf16 %v1075_v47, %v1075_v47  ;;  %1806 = vrcp.f32 %v2091_v18 }
 0x305   : > { %1617 = vmatmul.msk.bf16.vlgmr.msra.gmra.mxu1 %vm932_vm2, %v1077_v50 }
 0x308   : > { %v1805_v51 = vpop.eup %1804 }
 0x309   : > { %v1076_v52 = vmul.f32 %v1805_v51, %v1797_v31  ;;  %v1107_v53 = vpop.permute.xlu2 %1106  ;;  %v1807_v19 = vpop.eup %1806 }
 0x30a   : > { %v1112_v54 = vsel %vm960_vm3, %v1107_v53, 0  ;;  %v1189_v20 = vmul.f32 32.0, %v1807_v19  ;;  %vm1193_vm4 = vweird.f32 %v1807_v19  ;;  %v1784_v53 = vld [vmem:[%s2528_s11] ss:$0 sm:$0xff] }
 0x30b   : > { %v1078_v55 = vpack.c.bf16 %v1076_v52, %v1076_v52  ;;  %1121 = vmatpush.bf16.msra.mxu2 %v1112_v54 }
 0x30c   : > { %v1190_v21 = vsub.f32 1.0, %v1189_v20 }
 0x30e   : > { %1618 = vmatmul.msk.bf16.vlgmr.msra.gmra.mxu2 %vm932_vm2, %v1078_v55  ;;  %v1191_v22 = vmul.f32 %v1807_v19, %v1190_v21 }
 0x310   : > { %v1192_v23 = vadd.f32 %v1807_v19, %v1191_v22 }
 0x315   : > { %v973_v56 = vpop.f32.mrf.mxu1 }
 0x31d   : > { %v975_v57 = vpop.f32.mrf.mxu1 }
 0x31e   : > { %v1785_v57 = vld [vmem:[%s2529_s12] ss:$0 sm:$0xff] }
 0x323   : > { %v992_v58 = vpop.f32.mrf.mxu2 }
 0x324   : > { %v996_v59 = vpack.c.bf16 %v992_v58, %v973_v56 }
 0x326   : > { %1628 = vmatmul.msk.bf16.vlgmr.msrb.gmra.mxu0 %vm893_vm1, %v996_v59 }
 0x32b   : > { %v994_v60 = vpop.f32.mrf.mxu2 }
 0x382   : > { %v1099_v62 = vpop.f32.mrf.mxu1 }
 0x38a   : > { %v1101_v63 = vpop.f32.mrf.mxu1 }
 0x391   : > { %v1123_v0 = vpop.f32.mrf.mxu2 }
 0x392   : > { %v1127_v1 = vpack.c.bf16 %v1123_v0, %v1099_v62  ;;  %v1674_v0 = vld [vmem:[%s2585_s0 + $0x18] sm:$0xff] }
 0x393   : > { %1330 = vmatpush.bf16.msrb.mxu2 %v1674_v0 }
 0x394   : > { %1623 = vmatmul.msk.bf16.vlgmr.msra.gmra.mxu3 %vm893_vm1, %v1127_v1  ;;  %v1673_v1 = vld [vmem:[%s2586_s16 + $0x10] sm:$0xff] }
 0x397   : > { %1331 = vmatpush.bf16.msrb.mxu2 %v1673_v1 }
 0x399   : > { %v1125_v2 = vpop.f32.mrf.mxu2 }
 0x39a   : > { %v1672_v2 = vld [vmem:[%s2586_s16 + $0x8] sm:$0xff] }
 0x39b   : > { %1332 = vmatpush.bf16.msrb.mxu2 %v1672_v2 }
 0x3a3   : > { %v1169_v3 = vpop.f32.mrf.mxu0 }
 0x3ab   : > { %v1171_v12 = vpop.f32.mrf.mxu0 }
 0x417   : > { %v1146_v7 = vpop.f32.mrf.mxu3 }
 0x418   : > { %v1170_v8 = vadd.f32 %v1169_v3, %v1146_v7  ;;  %v1671_v3 = vld [vmem:[%s2586_s16] sm:$0xff] }
 0x419   : > { %1333 = vmatpush.bf16.msrb.mxu2 %v1671_v3  ;;  %v1786_v7 = vld [vmem:[%s2587_s2] ss:$0 sm:$0xff]  ;;  %s1413_s2 = sshll.u32 %s745_s4, 4  ;;  %s1414_s2 = int_to_ptr.vmem [resolvable:$true] %s1413_s2 }
 0x41a   : > { %v1178_v9 = vadd.f32 %v1783_v6, %v1170_v8 }
 0x41c   : > { %v1180_v10 = vadd.f32 %v1178_v9, %v2372_v4  ;;  %v2433_v4 = vsel %vm1193_vm4, %v1807_v19, %v1192_v23 }
 0x41e   : > { %v1182_v11 = vsel %vm786_vm0, %v1180_v10, 0.0 }
 0x41f   : > { %1183 = vadd.xlane.f32.xlu1 %v1182_v11  ;;  %v1148_v13 = vpop.f32.mrf.mxu3 }
 0x420   : > { %v1172_v14 = vadd.f32 %v1171_v12, %v1148_v13 }
 0x422   : > { %v1179_v15 = vadd.f32 %v1783_v6, %v1172_v14  ;;  %v1787_v14 = vld [vmem:[%s2588_s20] ss:$0 sm:$0xff]  ;;  %s2012_s20 = scalar_lea.hbm %s2011_s17, 16 }
 0x423   : > { %p2013_p1 = scmp.ne.s32.totalorder %s2011_s17, %s2012_s20  ;;  %p2018_p11 = scmp.lt.s32.totalorder %s2016_s18, %s2012_s20 }
 0x424   : > { %v1181_v16 = vadd.f32 %v1179_v15, %v2374_v5 }
 0x425   : > { %p2014_p8 = pnand %p2013_p1, %p2278_p3  ;;  %p2019_p9 = por %p2018_p11, %p2017_p10 }
 0x426   : > { %v1185_v17 = vsel %vm786_vm0, %v1181_v16, 0.0 }
 0x427   : > { %1186 = vadd.xlane.f32.xlu1 %v1185_v17  ;;  %p2015_p2 = pneg %p2014_p8 }
 0x429   : > { %p2020_p12 = pnand %p2019_p9, %p2015_p2 }
 0x492   : > { %v1184_v24 = vpop.xlane.xlu1 %1183 }
 0x493   : > { %v1195_v25 = vmul.f32 %v2433_v4, %v1184_v24 }
 0x495   : > { %v1197_v26 = vsub.f32 %v1180_v10, %v1195_v25 }
 0x497   : > { %v1199_v27 = vmul.f32 %v1197_v26, %v1197_v26 }
 0x499   : > { %v1201_v5 = vsel %vm786_vm0, %v1199_v27, 0.0 }
 0x49a   : > { %1202 = vadd.xlane.f32.xlu2 %v1201_v5  ;;  %v1187_v28 = vpop.xlane.xlu1 %1186 }
 0x49b   : > { %v1196_v29 = vmul.f32 %v2433_v4, %v1187_v28 }
 0x49d   : > { %v1198_v30 = vsub.f32 %v1181_v16, %v1196_v29 }
 0x49f   : > { %v1200_v31 = vmul.f32 %v1198_v30, %v1198_v30 }
 0x4a1   : > { %v1204_v32 = vsel %vm786_vm0, %v1200_v31, 0.0 }
 0x4a2   : > { %1205 = vadd.xlane.f32.xlu1 %v1204_v32 }
 0x50d   : > { %v1203_v34 = vpop.xlane.xlu2 %1202 }
 0x50e   : > { %v1207_v35 = vmul.f32 %v1203_v34, %v2433_v4 }
 0x510   : > { %v1209_v37 = vadd.f32 1e-05, %v1207_v35 }
 0x512   : > { %1808 = vrsqrt.f32 %v1209_v37  ;;  %vm1217_vm6 = vweird.f32 %v1209_v37 }
 0x515   : > { %v1206_v38 = vpop.xlane.xlu1 %1205 }
 0x516   : > { %v1208_v39 = vmul.f32 %v1206_v38, %v2433_v4 }
 0x518   : > { %v1809_v40 = vpop.eup %1808  ;;  %v1210_v41 = vadd.f32 1e-05, %v1208_v39 }
 0x519   : > { %v1212_v42 = vmul.f32 %v1809_v40, %v1209_v37  ;;  %vm1218_vm5 = vweird.f32 %v1809_v40 }
 0x51a   : > { %1810 = vrsqrt.f32 %v1210_v41  ;;  %vm1219_vm7 = vmor %vm1217_vm6, %vm1218_vm5  ;;  %vm1227_vm9 = vweird.f32 %v1210_v41 }
 0x51b   : > { %v1213_v43 = vmul.f32 %v1809_v40, %v1212_v42 }
 0x51d   : > { %v1214_v44 = vmul.f32 0.5, %v1213_v43 }
 0x51f   : > { %v1215_v45 = vsub.f32 1.5, %v1214_v44 }
 0x520   : > { %v1811_v46 = vpop.eup %1810 }
 0x521   : > { %v1216_v47 = vmul.f32 %v1809_v40, %v1215_v45  ;;  %v1222_v48 = vmul.f32 %v1811_v46, %v1210_v41  ;;  %vm1228_vm8 = vweird.f32 %v1811_v46 }
 0x522   : > { %vm1229_vm10 = vmor %vm1227_vm9, %vm1228_vm8 }
 0x523   : > { %v1223_v49 = vmul.f32 %v1811_v46, %v1222_v48  ;;  %v1220_v50 = vsel %vm1219_vm7, %v1809_v40, %v1216_v47  ;;  %v1789_v48 = vld [vmem:[%s2590_s15] ss:$0 sm:$0xff] }
 0x524   : > { %v1231_v54 = vmul.f32 %v1220_v50, %v1197_v26 }
 0x525   : > { %v1224_v51 = vmul.f32 0.5, %v1223_v49 }
 0x526   : > { %v1237_v58 = vmul.f32 %v1784_v53, %v1231_v54 }
 0x527   : > { %v1225_v52 = vsub.f32 1.5, %v1224_v51 }
 0x528   : > { %v1243_v61 = vadd.f32 %v1785_v57, %v1237_v58 }
 0x529   : > { %v1226_v55 = vmul.f32 %v1811_v46, %v1225_v52 }
 0x52b   : > { %v1230_v56 = vsel %vm1229_vm10, %v1811_v46, %v1226_v55  ;;  %v1788_v46 = vld [vmem:[%s2589_s5] ss:$0 sm:$0xff] }
 0x52c   : > { %v1232_v59 = vmul.f32 %v1230_v56, %v1198_v30 }
 0x52e   : > { %v1238_v60 = vmul.f32 %v1784_v53, %v1232_v59 }
 0x530   : > { %v1244_v62 = vadd.f32 %v1785_v57, %v1238_v60 }
 0x532   : > { %v1245_v63 = vpack.c.bf16 %v1244_v62, %v1243_v61 }
 0x534   : > { %1637 = vmatmul.msk.bf16.vlgmr.msrb.gmra.mxu1 %vm786_vm0, %v1245_v63 }
 0x5b1   : > { %v1278_v6 = vpop.f32.mrf.mxu1 }
 0x5b2   : > { %v1279_v8 = vadd.f32 %v1786_v7, %v1278_v6 }
 0x5b4   : > { %v1283_v11 = vmax.f32 %v1279_v8, 0.0 }
 0x5b9   : > { %v1280_v9 = vpop.f32.mrf.mxu1 }
 0x5ba   : > { %v1281_v10 = vadd.f32 %v1786_v7, %v1280_v9 }
 0x5bc   : > { %v1284_v12 = vmax.f32 %v1281_v10, 0.0 }
 0x5be   : > { %v1285_v13 = vpack.c.bf16 %v1284_v12, %v1283_v11 }
 0x5c0   : > { %1654 = vmatmul.msk.bf16.vlgmr.msrb.gmra.mxu2 %vm1322_vm11, %v1285_v13 }
 0x643   : > { %v1335_v15 = vpop.f32.mrf.mxu2 }
 0x644   : > { %v1336_v16 = vadd.f32 %v1787_v14, %v1335_v15 }
 0x646   : > { %v1340_v17 = vadd.f32 %v1336_v16, %v1243_v61 }
 0x648   : > { %v1342_v18 = vsel %vm786_vm0, %v1340_v17, 0.0 }
 0x649   : > { %1343 = vadd.xlane.f32.xlu0 %v1342_v18 }
 0x64b   : > { %v1337_v19 = vpop.f32.mrf.mxu2 }
 0x64c   : > { %v1338_v20 = vadd.f32 %v1787_v14, %v1337_v19 }
 0x64e   : > { %v1341_v21 = vadd.f32 %v1338_v20, %v1244_v62 }
 0x650   : > { %v1345_v22 = vsel %vm786_vm0, %v1341_v21, 0.0 }
 0x651   : > { %1346 = vadd.xlane.f32.xlu1 %v1345_v22 }
 0x6bc   : > { %v1344_v23 = vpop.xlane.xlu0 %1343 }
 0x6bd   : > { %v1348_v24 = vmul.f32 %v1344_v23, %v2433_v4 }
 0x6bf   : > { %v1350_v25 = vsub.f32 %v1340_v17, %v1348_v24 }
 0x6c1   : > { %v1352_v26 = vmul.f32 %v1350_v25, %v1350_v25 }
 0x6c3   : > { %v1354_v27 = vsel %vm786_vm0, %v1352_v26, 0.0 }
 0x6c4   : > { %v1347_v5 = vpop.xlane.xlu1 %1346  ;;  %1355 = vadd.xlane.f32.xlu1 %v1354_v27 }
 0x6c5   : > { %v1349_v28 = vmul.f32 %v1347_v5, %v2433_v4 }
 0x6c7   : > { %v1351_v29 = vsub.f32 %v1341_v21, %v1349_v28 }
 0x6c9   : > { %v1353_v30 = vmul.f32 %v1351_v29, %v1351_v29 }
 0x6cb   : > { %v1357_v31 = vsel %vm786_vm0, %v1353_v30, 0.0 }
 0x6cc   : > { %1358 = vadd.xlane.f32.xlu1 %v1357_v31 }
 0x737   : > { %v1356_v32 = vpop.xlane.xlu1 %1355 }
 0x738   : > { %v1360_v33 = vmul.f32 %v1356_v32, %v2433_v4 }
 0x73a   : > { %v1362_v34 = vadd.f32 1e-05, %v1360_v33 }
 0x73c   : > { %1812 = vrsqrt.f32 %v1362_v34  ;;  %vm1370_vm13 = vweird.f32 %v1362_v34 }
 0x73f   : > { %v1359_v35 = vpop.xlane.xlu1 %1358 }
 0x740   : > { %v1361_v36 = vmul.f32 %v1359_v35, %v2433_v4 }
 0x742   : > { %v1813_v37 = vpop.eup %1812  ;;  %v1363_v38 = vadd.f32 1e-05, %v1361_v36 }
 0x743   : > { %v1365_v39 = vmul.f32 %v1813_v37, %v1362_v34  ;;  %vm1371_vm12 = vweird.f32 %v1813_v37 }
 0x744   : > { %1814 = vrsqrt.f32 %v1363_v38  ;;  %vm1372_vm14 = vmor %vm1370_vm13, %vm1371_vm12  ;;  %vm1380_vm1 = vweird.f32 %v1363_v38 }
 0x745   : > { %v1366_v40 = vmul.f32 %v1813_v37, %v1365_v39 }
 0x747   : > { %v1367_v41 = vmul.f32 0.5, %v1366_v40 }
 0x749   : > { %v1368_v42 = vsub.f32 1.5, %v1367_v41 }
 0x74a   : > { %v1815_v43 = vpop.eup %1814 }
 0x74b   : > { %v1369_v44 = vmul.f32 %v1813_v37, %v1368_v42  ;;  %v1375_v45 = vmul.f32 %v1815_v43, %v1363_v38  ;;  %vm1381_vm15 = vweird.f32 %v1815_v43 }
 0x74c   : > { %vm1382_vm2 = vmor %vm1380_vm1, %vm1381_vm15 }
 0x74d   : > { %v1373_v4 = vsel %vm1372_vm14, %v1813_v37, %v1369_v44  ;;  %v1376_v47 = vmul.f32 %v1815_v43, %v1375_v45 }
 0x74e   : > { %v1384_v49 = vmul.f32 %v1373_v4, %v1350_v25 }
 0x74f   : > { %v1377_v50 = vmul.f32 0.5, %v1376_v47 }
 0x750   : > { %v1390_v51 = vmul.f32 %v1788_v46, %v1384_v49 }
 0x751   : > { %v1378_v52 = vsub.f32 1.5, %v1377_v50 }
 0x752   : > { %v1396_v53 = vadd.f32 %v1789_v48, %v1390_v51 }
 0x753   : > { %v1379_v54 = vmul.f32 %v1815_v43, %v1378_v52 }
 0x754   : > { %1398 = vst.msk [vmem:[%s745_s4] sm:$0xff] %vm786_vm0, %v1396_v53 }
 0x755   : > { %v1383_v55 = vsel %vm1382_vm2, %v1815_v43, %v1379_v54 }
 0x756   : > { %v1385_v56 = vmul.f32 %v1383_v55, %v1351_v29 }
 0x758   : > { %v1391_v57 = vmul.f32 %v1788_v46, %v1385_v56 }
 0x75a   : > { %v1397_v58 = vadd.f32 %v1789_v48, %v1391_v57 }
 0x75c   : > { %1399 = vst.msk [vmem:[%s745_s4 + $0x8] sm:$0xff] %vm786_vm0, %v1397_v58 }
 0x75d   : > { %2023 = shalt.err (!%p2020_p12)
}
 0x75e   : > { %s2092_s22 = smov 128   ;;  %s2093_s0 = smov 8  }
 0x75f   : > { %1696 = dma.vmem_to_hbm [thread:$0]  (%p2278_p3), %s1414_s2, 256, %s1416_s1, %s1401_s28, %s2092_s22, %s2092_s22, %s2093_s0  }
 0x760 PF: > { %s2593_s15 = sld [smem:[#allocation20_spill]]  ;;  %p2595_p13 = scmp.ge.s32.totalorder %s2078_s21, 2 }
 0x762   : > { %p1719_p0 = pnand %p2595_p13, %p2229_p6 }
 0x764   : > { %p1720_p5 = pneg %p1719_p0 }
 0x766   : > { %s1430_s27 = sand.u32 1, %s2593_s15  }
 0x767   : > { %s1431_s9 = scalar_lea.sflag [#allocation4], %s1430_s27 }
 0x768   : > { %2061 = dma.done.wait (%p1720_p5), %s1431_s9, 256  }
 0x769   : > { %2063 = vsyncadd (%p1720_p5), %s1431_s9, 4294967040  ;;  %s2596_s21 = sld [smem:[#allocation23_spill]]  ;;  %s2599_s0 = smov %s2070_s30 }
 0x76a   : > { %s2597_s19 = sld [smem:[#allocation21_spill]] }
 0x76b   : > { %s2598_s20 = sld [smem:[#allocation25_spill]] }
 0x76f   : > { %p37_p7 = scmp.ge.s32.totalorder %s2596_s21, 4  }
 0x770   : > { %s2600_s30 = smov %s2597_s19 }
 0x771   :  { %39 = sbr.rel (!%p37_p7) target bundleno = 24 (0x18), region = 173 }
 0x776   :  { %1437 = vsyncpa [#allocation3], 1 }
 0x777   :  { %1439 = vsyncpa [#allocation3 + $0x1], 1 }
 0x778   :  { %1440 = vsyncpa [#allocation6], 1 }
 0x779   :  { %1442 = vsyncpa [#allocation6 + $0x1], 1 }
 0x77a   :  { %1443 = vsyncpa [#allocation9], 1 }
 0x77b   :  { %1444 = vsyncpa [#allocation12], 1 }
 0x77c   :  { %1445 = vsyncpa [#allocation4], 1 }
 0x77d   :  { %1447 = vsyncpa [#allocation4 + $0x1], 1 }

</bundles_post_ra>
